<compile_context>
chip_gen: v7x
topology: tpu7x:2x2x1
jax: 0.10.0
libtpu: 0.0.40
codegen_flags: <defaults>
</compile_context>

<pallas_src>
import jax
import jax.numpy as jnp
import numpy as np
from jax.experimental import pallas as pl
from jax.experimental.pallas import tpu as pltpu


# ----------------------------------------------------------------------------
# Pallas kernels
# ----------------------------------------------------------------------------
def _conv_pool_relu_kernel(p_ref, w_ref, b_ref, o_ref):
    """Fused conv (as matmul) + bias + 2x2 max-pool + ReLU for a row tile.

    p_ref is (4, tile_r, k*k*Cin): im2col patches of the conv-output positions
    belonging to each of the four 2x2 pooling taps (dh, dw), rows ordered by
    (image, pooled position).  max over the four matmul results == max-pool of
    the convolution (per-channel bias commutes with the max, and
    relu(maxpool(x)) == maxpool(relu(x))).
    """
    w = w_ref[...]
    y = jnp.dot(p_ref[0], w, preferred_element_type=jnp.float32)
    y = jnp.maximum(y, jnp.dot(p_ref[1], w, preferred_element_type=jnp.float32))
    y = jnp.maximum(y, jnp.dot(p_ref[2], w, preferred_element_type=jnp.float32))
    y = jnp.maximum(y, jnp.dot(p_ref[3], w, preferred_element_type=jnp.float32))
    o_ref[...] = jnp.maximum(y + b_ref[...], 0.0)


def _fc_stack_kernel(x_ref, w1_ref, b1_ref, w2_ref, b2_ref, w3_ref, b3_ref,
                     o_ref):
    """fc1 + ReLU -> fc2 + ReLU -> fc3 -> row softmax, all in one kernel.

    All weights (padded to 768x256, 256x128, 128x128) stay resident in VMEM;
    only the (tile_m, 768) activation block is streamed.  fc3's pad lanes have
    bias -1e30, so they contribute exp(...)=0 to the softmax: no in-kernel
    masking needed and the (tile_m, 128) output is lane-dense.
    """
    h = jnp.dot(x_ref[...], w1_ref[...], preferred_element_type=jnp.float32)
    h = jnp.maximum(h + b1_ref[...], 0.0)
    h = jnp.dot(h, w2_ref[...], preferred_element_type=jnp.float32)
    h = jnp.maximum(h + b2_ref[...], 0.0)
    z = jnp.dot(h, w3_ref[...], preferred_element_type=jnp.float32)
    z = z + b3_ref[...]
    z = z - jnp.max(z, axis=-1, keepdims=True)
    e = jnp.exp(z)
    s = jnp.sum(e, axis=-1, keepdims=True)
    r = pl.reciprocal(s, approx=True)
    r = r * (2.0 - s * r)                     # one Newton step -> ~exact 1/s
    o_ref[...] = e * r


# ----------------------------------------------------------------------------
# Tiling helpers / XLA glue
# ----------------------------------------------------------------------------
def _round_up(a, m):
    return ((a + m - 1) // m) * m


def _row_tiling(rows, target=512):
    """Pick (num_tiles, tile, rows_padded): >=2 tiles whenever possible so
    v7x's second TensorCore gets work; cdiv-based tile bounds padding waste."""
    num_tiles = max(pl.cdiv(rows, target), 2 if rows >= 16 else 1)
    tile = _round_up(pl.cdiv(rows, num_tiles), 8)
    return num_tiles, tile, tile * num_tiles


def pool_parity_patches(x, k):
    """For each 2x2 pooling parity (dh, dw), build the im2col patch matrix of
    the conv-output positions that parity covers, directly from the NHWC
    activation (no full-im2col intermediate).  Column order is contiguous-tap:
    (ki*k + kj)*C + ci.  Returns ((4, B*PH*PW, k*k*C), (PH, PW))."""
    B, H, W, C = x.shape
    OH, OW = H - k + 1, W - k + 1
    PH, PW = OH // 2, OW // 2
    groups = []
    for dh in (0, 1):
        for dw in (0, 1):
            taps = [x[:, dh + ki: dh + ki + 2 * PH: 2,
                      dw + kj: dw + kj + 2 * PW: 2, :]
                    for ki in range(k) for kj in range(k)]
            g = jnp.concatenate(taps, axis=-1)           # (B, PH, PW, k*k*C)
            groups.append(g.reshape(B * PH * PW, k * k * C))
    return jnp.stack(groups, axis=0), (PH, PW)


def conv_pool_relu(p_stack, w_mat, bias2d, *, target_rows=512):
    """One fused pallas_call per conv stage, grid over row tiles ("parallel")."""
    G, R, D = p_stack.shape
    C = w_mat.shape[1]
    num_tiles, tile_r, R_pad = _row_tiling(R, target_rows)
    if R_pad != R:
        p_stack = jnp.pad(p_stack, ((0, 0), (0, R_pad - R), (0, 0)))
    out = pl.pallas_call(
        _conv_pool_relu_kernel,
        out_shape=jax.ShapeDtypeStruct((R_pad, C), jnp.float32),
        grid=(num_tiles,),
        in_specs=[
            pl.BlockSpec((G, tile_r, D), lambda i: (0, i, 0)),
            pl.BlockSpec((D, C), lambda i: (0, 0)),
            pl.BlockSpec((1, C), lambda i: (0, 0)),
        ],
        out_specs=pl.BlockSpec((tile_r, C), lambda i: (i, 0)),
        compiler_params=pltpu.CompilerParams(
            dimension_semantics=("parallel",)),
    )(p_stack, w_mat, bias2d)
    return out[:R]                                        # (R, C)


def fc_stack(x, w1, b1, w2, b2, w3, b3, *, target_rows=512):
    """Single pallas_call for fc1->fc2->fc3->softmax, tiled over rows."""
    M, K = x.shape
    N1, N2, N3 = w1.shape[1], w2.shape[1], w3.shape[1]
    num_tiles, tile_m, M_pad = _row_tiling(M, target_rows)
    x_p = jnp.pad(x, ((0, M_pad - M), (0, 0))) if M_pad != M else x

    out = pl.pallas_call(
        _fc_stack_kernel,
        out_shape=jax.ShapeDtypeStruct((M_pad, N3), jnp.float32),
        grid=(num_tiles,),
        in_specs=[
            pl.BlockSpec((tile_m, K), lambda i: (i, 0)),
            pl.BlockSpec((K, N1), lambda i: (0, 0)),
            pl.BlockSpec((1, N1), lambda i: (0, 0)),
            pl.BlockSpec((N1, N2), lambda i: (0, 0)),
            pl.BlockSpec((1, N2), lambda i: (0, 0)),
            pl.BlockSpec((N2, N3), lambda i: (0, 0)),
            pl.BlockSpec((1, N3), lambda i: (0, 0)),
        ],
        out_specs=pl.BlockSpec((tile_m, N3), lambda i: (i, 0)),
        compiler_params=pltpu.CompilerParams(
            dimension_semantics=("parallel",)),
    )(x_p, w1, b1, w2, b2, w3, b3)
    return out[:M]                                        # (M, N3) lane-dense


# ----------------------------------------------------------------------------
# Parameters
# ----------------------------------------------------------------------------
def init_params(key):
    """Deterministic PyTorch-style uniform(-1/sqrt(fan_in), 1/sqrt(fan_in))."""
    ks = jax.random.split(key, 10)

    def u(k, shape, fan_in):
        bound = 1.0 / np.sqrt(fan_in)
        return jax.random.uniform(k, shape, jnp.float32, -bound, bound)

    return {
        "conv1_w": u(ks[0], (8, 1, 5, 5), 1 * 5 * 5),
        "conv1_b": u(ks[1], (8,), 1 * 5 * 5),
        "conv2_w": u(ks[2], (48, 8, 5, 5), 8 * 5 * 5),
        "conv2_b": u(ks[3], (48,), 8 * 5 * 5),
        "fc1_w":   u(ks[4], (250, 48 * 4 * 4), 48 * 4 * 4),
        "fc1_b":   u(ks[5], (250,), 48 * 4 * 4),
        "fc2_w":   u(ks[6], (75, 250), 250),
        "fc2_b":   u(ks[7], (75,), 250),
        "fc3_w":   u(ks[8], (26, 75), 75),
        "fc3_b":   u(ks[9], (26,), 75),
    }


def prepare_params(params):
    """One-time weight layout prep (hoisted out of the per-call trace):
    conv weights -> contiguous-tap (ki,kj,ci) matmul matrices; the NCHW
    flatten permutation folded into fc1; FC dims zero-padded to MXU/lane
    friendly sizes; fc3 pad-lane bias set to -1e30 so the in-kernel softmax
    ignores the padding."""
    prep = {}
    prep["conv1_w"] = params["conv1_w"].transpose(2, 3, 1, 0).reshape(25, 8)
    prep["conv1_b"] = params["conv1_b"].reshape(1, 8)
    prep["conv2_w"] = params["conv2_w"].transpose(2, 3, 1, 0).reshape(200, 48)
    prep["conv2_b"] = params["conv2_b"].reshape(1, 48)

    # fc1: fold the NCHW `view(-1, 768)` permutation (c,h,w) -> NHWC (h,w,c);
    # pad N 250 -> 256.
    w1 = (params["fc1_w"].reshape(250, 48, 4, 4)
          .transpose(2, 3, 1, 0).reshape(768, 250))
    prep["fc1_w"] = jnp.pad(w1, ((0, 0), (0, 6)))
    prep["fc1_b"] = jnp.pad(params["fc1_b"], (0, 6)).reshape(1, 256)

    # fc2: K 250 -> 256 (pad activation columns are exact zeros), N 75 -> 128.
    prep["fc2_w"] = jnp.pad(params["fc2_w"].T, ((0, 6), (0, 53)))
    prep["fc2_b"] = jnp.pad(params["fc2_b"], (0, 53)).reshape(1, 128)

    # fc3: K 75 -> 128, N 26 -> 128 (lane-dense output); pad logits get a huge
    # negative bias so softmax treats them as exp(...) == 0.
    prep["fc3_w"] = jnp.pad(params["fc3_w"].T, ((0, 53), (0, 102)))
    prep["fc3_b"] = jnp.pad(params["fc3_b"], (0, 102),
                            constant_values=-1e30).reshape(1, 128)
    return prep


# ----------------------------------------------------------------------------
# Model
# ----------------------------------------------------------------------------
def net_forward(x_nchw, prep):
    B = x_nchw.shape[0]
    x = jnp.transpose(x_nchw, (0, 2, 3, 1))                   # NCHW -> NHWC

    # --- stage 1: Conv2d(1, 8, k=5) + maxpool2 + relu (one fused kernel) ---
    g1, (ph1, pw1) = pool_parity_patches(x, 5)                # (4, B*144, 25)
    h1 = conv_pool_relu(g1, prep["conv1_w"], prep["conv1_b"])  # (B*144, 8)
    h1 = h1.reshape(B, ph1, pw1, 8)                           # (B, 12, 12, 8)

    # --- stage 2: Conv2d(8, 48, k=5) + Dropout2d + maxpool2 + relu ---------
    # TODO(synk): nn.Dropout2d / F.dropout are identity here (inference mode).
    g2, (ph2, pw2) = pool_parity_patches(h1, 5)               # (4, B*16, 200)
    h2 = conv_pool_relu(g2, prep["conv2_w"], prep["conv2_b"])  # (B*16, 48)

    # Flatten in NHWC order; the NCHW flatten permutation is already folded
    # into fc1's (prepped) weight rows.
    flat = h2.reshape(B, ph2 * pw2 * 48)                      # (B, 768)

    # --- fused fc1 -> fc2 -> fc3 -> softmax (lane-dense, 128-wide) ---------
    probs = fc_stack(flat, prep["fc1_w"], prep["fc1_b"],
                     prep["fc2_w"], prep["fc2_b"],
                     prep["fc3_w"], prep["fc3_b"])            # (B, 128)
    return probs[:, :26]


# ----------------------------------------------------------------------------
# Pure-XLA reference (matches the PyTorch forward in eval mode)
# ----------------------------------------------------------------------------
def reference_forward(x, params):
    hp = jax.lax.Precision.HIGHEST
    y = jax.lax.conv_general_dilated(
        x, params["conv1_w"], (1, 1), "VALID",
        dimension_numbers=("NCHW", "OIHW", "NCHW"), precision=hp)
    y = y + params["conv1_b"].reshape(1, -1, 1, 1)
    y = jax.lax.reduce_window(y, -jnp.inf, jax.lax.max,
                              (1, 1, 2, 2), (1, 1, 2, 2), "VALID")
    y = jnp.maximum(y, 0.0)
    y = jax.lax.conv_general_dilated(
        y, params["conv2_w"], (1, 1), "VALID",
        dimension_numbers=("NCHW", "OIHW", "NCHW"), precision=hp)
    y = y + params["conv2_b"].reshape(1, -1, 1, 1)
    y = jax.lax.reduce_window(y, -jnp.inf, jax.lax.max,
                              (1, 1, 2, 2), (1, 1, 2, 2), "VALID")
    y = jnp.maximum(y, 0.0)
    y = y.reshape(y.shape[0], -1)
    y = jnp.maximum(jnp.dot(y, params["fc1_w"].T, precision=hp)
                    + params["fc1_b"], 0.0)
    y = jnp.maximum(jnp.dot(y, params["fc2_w"].T, precision=hp)
                    + params["fc2_b"], 0.0)
    y = jnp.dot(y, params["fc3_w"].T, precision=hp) + params["fc3_b"]
    return jax.nn.softmax(y, axis=-1)


if __name__ == "__main__":
    key = jax.random.PRNGKey(0)
    kx, kp = jax.random.split(key)
    params = init_params(kp)
    prep = prepare_params(params)         # one-time weight layout prep
    # 28x28 single-channel input is required for the 48*4*4 flatten to hold.
    x = jax.random.normal(kx, (2, 1, 28, 28), jnp.float32)

    fwd = jax.jit(net_forward)
    out = jax.block_until_ready(fwd(x, prep))

    assert out.shape == (2, 26), out.shape
    assert bool(jnp.all(jnp.isfinite(out)))
    assert bool(jnp.allclose(jnp.sum(out, axis=-1), 1.0, atol=1e-4))

    ref = reference_forward(x, params)
    max_err = float(jnp.max(jnp.abs(out - ref)))
    assert bool(jnp.allclose(out, ref, atol=5e-3, rtol=5e-3)), max_err

    print("KERNEL_OK")
</pallas_src>

<mosaic_0001>
module attributes {stable_mosaic.version = 11 : i64} {
  func.func @_conv_pool_relu_kernel(%arg0: i32, %arg1: memref<4x144x25xf32, #tpu.memory_space<vmem>>, %arg2: memref<25x8xf32, #tpu.memory_space<vmem>>, %arg3: memref<1x8xf32, #tpu.memory_space<vmem>>, %arg4: memref<144x8xf32, #tpu.memory_space<vmem>>) attributes {dimension_semantics = [#tpu.dimension_semantics<parallel>], iteration_bounds = array<i64: 2>, scalar_prefetch = 0 : i64, scratch_operands = 0 : i64, tpu.core_type = #tpu.core_type<tc>, window_params = [{transform_indices = @transform_0, window_bounds = array<i64: 4, 144, 25>}, {pipeline_mode = #tpu.pipeline_mode<synchronous>, transform_indices = @transform_1, window_bounds = array<i64: 25, 8>}, {pipeline_mode = #tpu.pipeline_mode<synchronous>, transform_indices = @transform_2, window_bounds = array<i64: 1, 8>}, {transform_indices = @transform_3, window_bounds = array<i64: 144, 8>}]} {
    %c0 = arith.constant 0 : index
    %c0_0 = arith.constant 0 : index
    %0 = vector.load %arg2[%c0, %c0_0] : memref<25x8xf32, #tpu.memory_space<vmem>>, vector<25x8xf32>
    %c0_1 = arith.constant 0 : index
    %c0_2 = arith.constant 0 : index
    %c0_3 = arith.constant 0 : index
    %1 = vector.load %arg1[%c0_1, %c0_2, %c0_3] : memref<4x144x25xf32, #tpu.memory_space<vmem>>, vector<1x144x25xf32>
    %2 = vector.shape_cast %1 : vector<1x144x25xf32> to vector<144x25xf32>
    %cst = arith.constant dense<0.000000e+00> : vector<144x8xf32>
    %3 = tpu.matmul %2, %0, %cst {dimension_numbers = #tpu.dot_dimension_numbers<[1], [0], [0], [1], [0, 0, 1, 1], [], []>} : vector<144x25xf32>, vector<25x8xf32>, vector<144x8xf32> -> vector<144x8xf32>
    %c1 = arith.constant 1 : index
    %c0_4 = arith.constant 0 : index
    %c0_5 = arith.constant 0 : index
    %4 = vector.load %arg1[%c1, %c0_4, %c0_5] : memref<4x144x25xf32, #tpu.memory_space<vmem>>, vector<1x144x25xf32>
    %5 = vector.shape_cast %4 : vector<1x144x25xf32> to vector<144x25xf32>
    %cst_6 = arith.constant dense<0.000000e+00> : vector<144x8xf32>
    %6 = tpu.matmul %5, %0, %cst_6 {dimension_numbers = #tpu.dot_dimension_numbers<[1], [0], [0], [1], [0, 0, 1, 1], [], []>} : vector<144x25xf32>, vector<25x8xf32>, vector<144x8xf32> -> vector<144x8xf32>
    %7 = arith.maximumf %3, %6 : vector<144x8xf32>
    %c2 = arith.constant 2 : index
    %c0_7 = arith.constant 0 : index
    %c0_8 = arith.constant 0 : index
    %8 = vector.load %arg1[%c2, %c0_7, %c0_8] : memref<4x144x25xf32, #tpu.memory_space<vmem>>, vector<1x144x25xf32>
    %9 = vector.shape_cast %8 : vector<1x144x25xf32> to vector<144x25xf32>
    %cst_9 = arith.constant dense<0.000000e+00> : vector<144x8xf32>
    %10 = tpu.matmul %9, %0, %cst_9 {dimension_numbers = #tpu.dot_dimension_numbers<[1], [0], [0], [1], [0, 0, 1, 1], [], []>} : vector<144x25xf32>, vector<25x8xf32>, vector<144x8xf32> -> vector<144x8xf32>
    %11 = arith.maximumf %7, %10 : vector<144x8xf32>
    %c3 = arith.constant 3 : index
    %c0_10 = arith.constant 0 : index
    %c0_11 = arith.constant 0 : index
    %12 = vector.load %arg1[%c3, %c0_10, %c0_11] : memref<4x144x25xf32, #tpu.memory_space<vmem>>, vector<1x144x25xf32>
    %13 = vector.shape_cast %12 : vector<1x144x25xf32> to vector<144x25xf32>
    %cst_12 = arith.constant dense<0.000000e+00> : vector<144x8xf32>
    %14 = tpu.matmul %13, %0, %cst_12 {dimension_numbers = #tpu.dot_dimension_numbers<[1], [0], [0], [1], [0, 0, 1, 1], [], []>} : vector<144x25xf32>, vector<25x8xf32>, vector<144x8xf32> -> vector<144x8xf32>
    %15 = arith.maximumf %11, %14 : vector<144x8xf32>
    %c0_13 = arith.constant 0 : index
    %c0_14 = arith.constant 0 : index
    %16 = vector.load %arg3[%c0_13, %c0_14] : memref<1x8xf32, #tpu.memory_space<vmem>>, vector<1x8xf32>
    %17 = vector.broadcast %16 : vector<1x8xf32> to vector<144x8xf32>
    %18 = arith.addf %15, %17 : vector<144x8xf32>
    %cst_15 = arith.constant 0.000000e+00 : f32
    %19 = vector.broadcast %cst_15 : f32 to vector<144x8xf32>
    %20 = arith.maximumf %18, %19 : vector<144x8xf32>
    %c0_16 = arith.constant 0 : index
    %c0_17 = arith.constant 0 : index
    %21 = vector.load %arg4[%c0_16, %c0_17] : memref<144x8xf32, #tpu.memory_space<vmem>>, vector<144x8xf32>
    tpu.vector_store %arg4[%c0_16, %c0_17], %20 {strides = array<i32>} : memref<144x8xf32, #tpu.memory_space<vmem>>, vector<144x8xf32>,
    return
  }
  func.func @transform_0(%arg0: i32) -> (i32, i32, i32) {
    %c0_i32 = arith.constant 0 : i32
    %c0_i32_0 = arith.constant 0 : i32
    %c0_i32_1 = arith.constant 0 : i32
    return %c0_i32, %arg0, %c0_i32_0 : i32, i32, i32
  }
  func.func @transform_1(%arg0: i32) -> (i32, i32) {
    %c0_i32 = arith.constant 0 : i32
    %c0_i32_0 = arith.constant 0 : i32
    %c0_i32_1 = arith.constant 0 : i32
    return %c0_i32, %c0_i32_0 : i32, i32
  }
  func.func @transform_2(%arg0: i32) -> (i32, i32) {
    %c0_i32 = arith.constant 0 : i32
    %c0_i32_0 = arith.constant 0 : i32
    %c0_i32_1 = arith.constant 0 : i32
    return %c0_i32, %c0_i32_0 : i32, i32
  }
  func.func @transform_3(%arg0: i32) -> (i32, i32) {
    %c0_i32 = arith.constant 0 : i32
    %c0_i32_0 = arith.constant 0 : i32
    return %arg0, %c0_i32 : i32, i32
  }
}

module attributes {stable_mosaic.version = 11 : i64} {
  func.func @_conv_pool_relu_kernel(%arg0: i32, %arg1: memref<4x16x200xf32, #tpu.memory_space<vmem>>, %arg2: memref<200x48xf32, #tpu.memory_space<vmem>>, %arg3: memref<1x48xf32, #tpu.memory_space<vmem>>, %arg4: memref<16x48xf32, #tpu.memory_space<vmem>>) attributes {dimension_semantics = [#tpu.dimension_semantics<parallel>], iteration_bounds = array<i64: 2>, scalar_prefetch = 0 : i64, scratch_operands = 0 : i64, tpu.core_type = #tpu.core_type<tc>, window_params = [{transform_indices = @transform_0, window_bounds = array<i64: 4, 16, 200>}, {pipeline_mode = #tpu.pipeline_mode<synchronous>, transform_indices = @transform_1, window_bounds = array<i64: 200, 48>}, {pipeline_mode = #tpu.pipeline_mode<synchronous>, transform_indices = @transform_2, window_bounds = array<i64: 1, 48>}, {transform_indices = @transform_3, window_bounds = array<i64: 16, 48>}]} {
    %c0 = arith.constant 0 : index
    %c0_0 = arith.constant 0 : index
    %0 = vector.load %arg2[%c0, %c0_0] : memref<200x48xf32, #tpu.memory_space<vmem>>, vector<200x48xf32>
    %c0_1 = arith.constant 0 : index
    %c0_2 = arith.constant 0 : index
    %c0_3 = arith.constant 0 : index
    %1 = vector.load %arg1[%c0_1, %c0_2, %c0_3] : memref<4x16x200xf32, #tpu.memory_space<vmem>>, vector<1x16x200xf32>
    %2 = vector.shape_cast %1 : vector<1x16x200xf32> to vector<16x200xf32>
    %cst = arith.constant dense<0.000000e+00> : vector<16x48xf32>
    %3 = tpu.matmul %2, %0, %cst {dimension_numbers = #tpu.dot_dimension_numbers<[1], [0], [0], [1], [0, 0, 1, 1], [], []>} : vector<16x200xf32>, vector<200x48xf32>, vector<16x48xf32> -> vector<16x48xf32>
    %c1 = arith.constant 1 : index
    %c0_4 = arith.constant 0 : index
    %c0_5 = arith.constant 0 : index
    %4 = vector.load %arg1[%c1, %c0_4, %c0_5] : memref<4x16x200xf32, #tpu.memory_space<vmem>>, vector<1x16x200xf32>
    %5 = vector.shape_cast %4 : vector<1x16x200xf32> to vector<16x200xf32>
    %cst_6 = arith.constant dense<0.000000e+00> : vector<16x48xf32>
    %6 = tpu.matmul %5, %0, %cst_6 {dimension_numbers = #tpu.dot_dimension_numbers<[1], [0], [0], [1], [0, 0, 1, 1], [], []>} : vector<16x200xf32>, vector<200x48xf32>, vector<16x48xf32> -> vector<16x48xf32>
    %7 = arith.maximumf %3, %6 : vector<16x48xf32>
    %c2 = arith.constant 2 : index
    %c0_7 = arith.constant 0 : index
    %c0_8 = arith.constant 0 : index
    %8 = vector.load %arg1[%c2, %c0_7, %c0_8] : memref<4x16x200xf32, #tpu.memory_space<vmem>>, vector<1x16x200xf32>
    %9 = vector.shape_cast %8 : vector<1x16x200xf32> to vector<16x200xf32>
    %cst_9 = arith.constant dense<0.000000e+00> : vector<16x48xf32>
    %10 = tpu.matmul %9, %0, %cst_9 {dimension_numbers = #tpu.dot_dimension_numbers<[1], [0], [0], [1], [0, 0, 1, 1], [], []>} : vector<16x200xf32>, vector<200x48xf32>, vector<16x48xf32> -> vector<16x48xf32>
    %11 = arith.maximumf %7, %10 : vector<16x48xf32>
    %c3 = arith.constant 3 : index
    %c0_10 = arith.constant 0 : index
    %c0_11 = arith.constant 0 : index
    %12 = vector.load %arg1[%c3, %c0_10, %c0_11] : memref<4x16x200xf32, #tpu.memory_space<vmem>>, vector<1x16x200xf32>
    %13 = vector.shape_cast %12 : vector<1x16x200xf32> to vector<16x200xf32>
    %cst_12 = arith.constant dense<0.000000e+00> : vector<16x48xf32>
    %14 = tpu.matmul %13, %0, %cst_12 {dimension_numbers = #tpu.dot_dimension_numbers<[1], [0], [0], [1], [0, 0, 1, 1], [], []>} : vector<16x200xf32>, vector<200x48xf32>, vector<16x48xf32> -> vector<16x48xf32>
    %15 = arith.maximumf %11, %14 : vector<16x48xf32>
    %c0_13 = arith.constant 0 : index
    %c0_14 = arith.constant 0 : index
    %16 = vector.load %arg3[%c0_13, %c0_14] : memref<1x48xf32, #tpu.memory_space<vmem>>, vector<1x48xf32>
    %17 = vector.broadcast %16 : vector<1x48xf32> to vector<16x48xf32>
    %18 = arith.addf %15, %17 : vector<16x48xf32>
    %cst_15 = arith.constant 0.000000e+00 : f32
    %19 = vector.broadcast %cst_15 : f32 to vector<16x48xf32>
    %20 = arith.maximumf %18, %19 : vector<16x48xf32>
    %c0_16 = arith.constant 0 : index
    %c0_17 = arith.constant 0 : index
    %21 = vector.load %arg4[%c0_16, %c0_17] : memref<16x48xf32, #tpu.memory_space<vmem>>, vector<16x48xf32>
    tpu.vector_store %arg4[%c0_16, %c0_17], %20 {strides = array<i32>} : memref<16x48xf32, #tpu.memory_space<vmem>>, vector<16x48xf32>,
    return
  }
  func.func @transform_0(%arg0: i32) -> (i32, i32, i32) {
    %c0_i32 = arith.constant 0 : i32
    %c0_i32_0 = arith.constant 0 : i32
    %c0_i32_1 = arith.constant 0 : i32
    return %c0_i32, %arg0, %c0_i32_0 : i32, i32, i32
  }
  func.func @transform_1(%arg0: i32) -> (i32, i32) {
    %c0_i32 = arith.constant 0 : i32
    %c0_i32_0 = arith.constant 0 : i32
    %c0_i32_1 = arith.constant 0 : i32
    return %c0_i32, %c0_i32_0 : i32, i32
  }
  func.func @transform_2(%arg0: i32) -> (i32, i32) {
    %c0_i32 = arith.constant 0 : i32
    %c0_i32_0 = arith.constant 0 : i32
    %c0_i32_1 = arith.constant 0 : i32
    return %c0_i32, %c0_i32_0 : i32, i32
  }
  func.func @transform_3(%arg0: i32) -> (i32, i32) {
    %c0_i32 = arith.constant 0 : i32
    %c0_i32_0 = arith.constant 0 : i32
    return %arg0, %c0_i32 : i32, i32
  }
}

module attributes {stable_mosaic.version = 11 : i64} {
  func.func @_fc_stack_kernel(%arg0: i32, %arg1: memref<8x768xf32, #tpu.memory_space<vmem>>, %arg2: memref<768x256xf32, #tpu.memory_space<vmem>>, %arg3: memref<1x256xf32, #tpu.memory_space<vmem>>, %arg4: memref<256x128xf32, #tpu.memory_space<vmem>>, %arg5: memref<1x128xf32, #tpu.memory_space<vmem>>, %arg6: memref<128x128xf32, #tpu.memory_space<vmem>>, %arg7: memref<1x128xf32, #tpu.memory_space<vmem>>, %arg8: memref<8x128xf32, #tpu.memory_space<vmem>>) attributes {dimension_semantics = [#tpu.dimension_semantics<parallel>], iteration_bounds = array<i64: 1>, scalar_prefetch = 0 : i64, scratch_operands = 0 : i64, tpu.core_type = #tpu.core_type<tc>, window_params = [{transform_indices = @transform_0, window_bounds = array<i64: 8, 768>}, {pipeline_mode = #tpu.pipeline_mode<synchronous>, transform_indices = @transform_1, window_bounds = array<i64: 768, 256>}, {pipeline_mode = #tpu.pipeline_mode<synchronous>, transform_indices = @transform_2, window_bounds = array<i64: 1, 256>}, {pipeline_mode = #tpu.pipeline_mode<synchronous>, transform_indices = @transform_3, window_bounds = array<i64: 256, 128>}, {pipeline_mode = #tpu.pipeline_mode<synchronous>, transform_indices = @transform_4, window_bounds = array<i64: 1, 128>}, {pipeline_mode = #tpu.pipeline_mode<synchronous>, transform_indices = @transform_5, window_bounds = array<i64: 128, 128>}, {pipeline_mode = #tpu.pipeline_mode<synchronous>, transform_indices = @transform_6, window_bounds = array<i64: 1, 128>}, {transform_indices = @transform_7, window_bounds = array<i64: 8, 128>}]} {
    %c0 = arith.constant 0 : index
    %c0_0 = arith.constant 0 : index
    %0 = vector.load %arg1[%c0, %c0_0] : memref<8x768xf32, #tpu.memory_space<vmem>>, vector<8x768xf32>
    %c0_1 = arith.constant 0 : index
    %c0_2 = arith.constant 0 : index
    %1 = vector.load %arg2[%c0_1, %c0_2] : memref<768x256xf32, #tpu.memory_space<vmem>>, vector<768x256xf32>
    %cst = arith.constant dense<0.000000e+00> : vector<8x256xf32>
    %2 = tpu.matmul %0, %1, %cst {dimension_numbers = #tpu.dot_dimension_numbers<[1], [0], [0], [1], [0, 0, 1, 1], [], []>} : vector<8x768xf32>, vector<768x256xf32>, vector<8x256xf32> -> vector<8x256xf32>
    %c0_3 = arith.constant 0 : index
    %c0_4 = arith.constant 0 : index
    %3 = vector.load %arg3[%c0_3, %c0_4] : memref<1x256xf32, #tpu.memory_space<vmem>>, vector<1x256xf32>
    %4 = vector.broadcast %3 : vector<1x256xf32> to vector<8x256xf32>
    %5 = arith.addf %2, %4 : vector<8x256xf32>
    %cst_5 = arith.constant 0.000000e+00 : f32
    %6 = vector.broadcast %cst_5 : f32 to vector<8x256xf32>
    %7 = arith.maximumf %5, %6 : vector<8x256xf32>
    %c0_6 = arith.constant 0 : index
    %c0_7 = arith.constant 0 : index
    %8 = vector.load %arg4[%c0_6, %c0_7] : memref<256x128xf32, #tpu.memory_space<vmem>>, vector<256x128xf32>
    %cst_8 = arith.constant dense<0.000000e+00> : vector<8x128xf32>
    %9 = tpu.matmul %7, %8, %cst_8 {dimension_numbers = #tpu.dot_dimension_numbers<[1], [0], [0], [1], [0, 0, 1, 1], [], []>} : vector<8x256xf32>, vector<256x128xf32>, vector<8x128xf32> -> vector<8x128xf32>
    %c0_9 = arith.constant 0 : index
    %c0_10 = arith.constant 0 : index
    %10 = vector.load %arg5[%c0_9, %c0_10] : memref<1x128xf32, #tpu.memory_space<vmem>>, vector<1x128xf32>
    %11 = vector.broadcast %10 : vector<1x128xf32> to vector<8x128xf32>
    %12 = arith.addf %9, %11 : vector<8x128xf32>
    %cst_11 = arith.constant 0.000000e+00 : f32
    %13 = vector.broadcast %cst_11 : f32 to vector<8x128xf32>
    %14 = arith.maximumf %12, %13 : vector<8x128xf32>
    %c0_12 = arith.constant 0 : index
    %c0_13 = arith.constant 0 : index
    %15 = vector.load %arg6[%c0_12, %c0_13] : memref<128x128xf32, #tpu.memory_space<vmem>>, vector<128x128xf32>
    %cst_14 = arith.constant dense<0.000000e+00> : vector<8x128xf32>
    %16 = tpu.matmul %14, %15, %cst_14 {dimension_numbers = #tpu.dot_dimension_numbers<[1], [0], [0], [1], [0, 0, 1, 1], [], []>} : vector<8x128xf32>, vector<128x128xf32>, vector<8x128xf32> -> vector<8x128xf32>
    %c0_15 = arith.constant 0 : index
    %c0_16 = arith.constant 0 : index
    %17 = vector.load %arg7[%c0_15, %c0_16] : memref<1x128xf32, #tpu.memory_space<vmem>>, vector<1x128xf32>
    %18 = vector.broadcast %17 : vector<1x128xf32> to vector<8x128xf32>
    %19 = arith.addf %16, %18 : vector<8x128xf32>
    %cst_17 = arith.constant dense<0xFF800000> : vector<8xf32>
    %20 = vector.multi_reduction <maximumf>, %19, %cst_17 [1] : vector<8x128xf32> to vector<8xf32>
    %21 = vector.shape_cast %20 : vector<8xf32> to vector<8x1xf32>
    %22 = vector.broadcast %21 : vector<8x1xf32> to vector<8x128xf32>
    %23 = arith.subf %19, %22 : vector<8x128xf32>
    %24 = math.exp %23 : vector<8x128xf32>
    %cst_18 = arith.constant dense<0.000000e+00> : vector<8xf32>
    %25 = vector.multi_reduction <add>, %24, %cst_18 [1] : vector<8x128xf32> to vector<8xf32>
    %26 = vector.shape_cast %25 : vector<8xf32> to vector<8x1xf32>
    %27 = tpu.reciprocal %26 {approx = true} : vector<8x1xf32> -> vector<8x1xf32>
    %28 = arith.mulf %26, %27 : vector<8x1xf32>
    %cst_19 = arith.constant 2.000000e+00 : f32
    %29 = vector.broadcast %cst_19 : f32 to vector<8x1xf32>
    %30 = arith.subf %29, %28 : vector<8x1xf32>
    %31 = arith.mulf %27, %30 : vector<8x1xf32>
    %32 = vector.broadcast %31 : vector<8x1xf32> to vector<8x128xf32>
    %33 = arith.mulf %24, %32 : vector<8x128xf32>
    %c0_20 = arith.constant 0 : index
    %c0_21 = arith.constant 0 : index
    %34 = vector.load %arg8[%c0_20, %c0_21] : memref<8x128xf32, #tpu.memory_space<vmem>>, vector<8x128xf32>
    tpu.vector_store %arg8[%c0_20, %c0_21], %33 {strides = array<i32>} : memref<8x128xf32, #tpu.memory_space<vmem>>, vector<8x128xf32>,
    return
  }
  func.func @transform_0(%arg0: i32) -> (i32, i32) {
    %c0_i32 = arith.constant 0 : i32
    %c0_i32_0 = arith.constant 0 : i32
    return %arg0, %c0_i32 : i32, i32
  }
  func.func @transform_1(%arg0: i32) -> (i32, i32) {
    %c0_i32 = arith.constant 0 : i32
    %c0_i32_0 = arith.constant 0 : i32
    %c0_i32_1 = arith.constant 0 : i32
    return %c0_i32, %c0_i32_0 : i32, i32
  }
  func.func @transform_2(%arg0: i32) -> (i32, i32) {
    %c0_i32 = arith.constant 0 : i32
    %c0_i32_0 = arith.constant 0 : i32
    %c0_i32_1 = arith.constant 0 : i32
    return %c0_i32, %c0_i32_0 : i32, i32
  }
  func.func @transform_3(%arg0: i32) -> (i32, i32) {
    %c0_i32 = arith.constant 0 : i32
    %c0_i32_0 = arith.constant 0 : i32
    %c0_i32_1 = arith.constant 0 : i32
    return %c0_i32, %c0_i32_0 : i32, i32
  }
  func.func @transform_4(%arg0: i32) -> (i32, i32) {
    %c0_i32 = arith.constant 0 : i32
    %c0_i32_0 = arith.constant 0 : i32
    %c0_i32_1 = arith.constant 0 : i32
    return %c0_i32, %c0_i32_0 : i32, i32
  }
  func.func @transform_5(%arg0: i32) -> (i32, i32) {
    %c0_i32 = arith.constant 0 : i32
    %c0_i32_0 = arith.constant 0 : i32
    %c0_i32_1 = arith.constant 0 : i32
    return %c0_i32, %c0_i32_0 : i32, i32
  }
  func.func @transform_6(%arg0: i32) -> (i32, i32) {
    %c0_i32 = arith.constant 0 : i32
    %c0_i32_0 = arith.constant 0 : i32
    %c0_i32_1 = arith.constant 0 : i32
    return %c0_i32, %c0_i32_0 : i32, i32
  }
  func.func @transform_7(%arg0: i32) -> (i32, i32) {
    %c0_i32 = arith.constant 0 : i32
    %c0_i32_0 = arith.constant 0 : i32
    return %arg0, %c0_i32 : i32, i32
  }
}

</mosaic_0001>

<bundles_post_ra>
// kernel: net_forward.3
= control target key start
LH: loop header
LB: loop body
LE: loop exit
PB: predicated region body
PF: predicated region fallthrough
CT: control target
= control target key end

     0   :  { %s2071_s12 = smov 0   ;;  %s2073_s13 = smov 0   ;;  %s2651_s0 = inlined_call_operand.vmem [shape: f32[4,288,25], index: 0, kind: input, shape index: {}]   ;;  %s2652_s1 = inlined_call_operand.vmem [shape: f32[25,8], index: 1, kind: input, shape index: {}]   ;;  %s2653_s2 = inlined_call_operand.vmem [shape: f32[1,8], index: 2, kind: input, shape index: {}]   ;;  %s2654_s3 = inlined_call_operand.vmem [shape: f32[288,8], index: 3, kind: output, shape index: {}]  }
   0x1   :  { %s2075_s14 = smov 0  }
   0x2 LB: > { %s1590_s15 = sadd.s32 4294967295, %s2048_s14   ;;  %s2088_s16 = sadd.s32 1, %s2048_s14   ;;  %s2048_s14 = sphi %s2075_s14, %s2659_s14   ;;  %s2044_s13 = sphi %s2073_s13, %s2658_s13   ;;  %s2040_s12 = sphi %s2071_s12, %s2657_s12  }
   0x3   : > { %s17_s17 = ssub.s32 %s2048_s14, %s2088_s16  ;;  %s20_s18 = sadd.s32 1, %s2044_s13 }
   0x4   : > { %p18_p0 = scmp.eq.s32.totalorder %s17_s17, 0  ;;  %p27_p1 = scmp.ne.s32.totalorder %s2044_s13, %s2040_s12 }
   0x5   : > { %p28_p2 = scmp.eq.s32.totalorder %s2048_s14, 0  ;;  %p1593_p4 = scmp.ge.s32.totalorder %s2048_s14, 2 }
   0x6   : > { %s2097_s19 = scalar_select %p18_p0, %s2044_s13, %s20_s18  }
   0x7   : > { %p29_p3 = por %p28_p2, %p27_p1  ;;  %127 = sbr.rel (%p1593_p4) target bundleno = 55 (0x37), region = 24 }
   0xe   : > { %130 = sbr.rel (!%p29_p3) target bundleno = 55 (0x37), region = 28  ;;  %s132_s20 = sand.u32 (%p29_p3), 1, %s2044_s13  }
   0xf   : > { %s1730_s21 = smul.u32 (%p29_p3), 144, %s2048_s14 }
  0x10   : > { %s1999_s22 = smul.u32 (%p29_p3), 576, %s132_s20 }
  0x11   : > { %s2105_s25 = scalar_lea.vmem (%p29_p3), %s2651_s0, %s1730_s21 }
  0x12   : > { %v307_v0 = vld [vmem:[%s2105_s25] sm:$0xff] (%p29_p3)  ;;  %v309_v1 = vld [vmem:[%s2105_s25 + $0x8] sm:$0xff] (%p29_p3)  ;;  %v311_v2 = vld [vmem:[%s2105_s25 + $0x10] sm:$0xff] (%p29_p3)  ;;  %s2110_s26 = scalar_lea.vmem (%p29_p3), [#allocation2], %s1999_s22 }
  0x13   : > { %308 = vst [vmem:[%s2110_s26] sm:$0xff] (%p29_p3), %v307_v0  ;;  %310 = vst [vmem:[%s2110_s26 + $0x8] sm:$0xff] (%p29_p3), %v309_v1  ;;  %v313_v3 = vld [vmem:[%s2105_s25 + $0x18] sm:$0xff] (%p29_p3)  ;;  %v315_v4 = vld [vmem:[%s2105_s25 + $0x20] sm:$0xff] (%p29_p3) }
  0x14   : > { %312 = vst [vmem:[%s2110_s26 + $0x10] sm:$0xff] (%p29_p3), %v311_v2  ;;  %v317_v5 = vld [vmem:[%s2105_s25 + $0x28] sm:$0xff] (%p29_p3)  ;;  %314 = vst [vmem:[%s2110_s26 + $0x18] sm:$0xff] (%p29_p3), %v313_v3  ;;  %v319_v6 = vld [vmem:[%s2105_s25 + $0x30] sm:$0xff] (%p29_p3) }
  0x15   : > { %316 = vst [vmem:[%s2110_s26 + $0x20] sm:$0xff] %v315_v4  ;;  %318 = vst [vmem:[%s2110_s26 + $0x28] sm:$0xff] %v317_v5  ;;  %v321_v7 = vld [vmem:[%s2105_s25 + $0x38] sm:$0xff]  ;;  %v323_v8 = vld [vmem:[%s2105_s25 + $0x40] sm:$0xff] }
  0x16   : > { %320 = vst [vmem:[%s2110_s26 + $0x30] sm:$0xff] %v319_v6  ;;  %322 = vst [vmem:[%s2110_s26 + $0x38] sm:$0xff] %v321_v7  ;;  %v325_v9 = vld [vmem:[%s2105_s25 + $0x48] sm:$0xff]  ;;  %v327_v10 = vld [vmem:[%s2105_s25 + $0x50] sm:$0xff] }
  0x17   : > { %324 = vst [vmem:[%s2110_s26 + $0x40] sm:$0xff] %v323_v8  ;;  %v329_v11 = vld [vmem:[%s2105_s25 + $0x58] sm:$0xff]  ;;  %326 = vst [vmem:[%s2110_s26 + $0x48] sm:$0xff] %v325_v9  ;;  %v331_v12 = vld [vmem:[%s2105_s25 + $0x60] sm:$0xff] }
  0x18   : > { %328 = vst [vmem:[%s2110_s26 + $0x50] sm:$0xff] %v327_v10  ;;  %330 = vst [vmem:[%s2110_s26 + $0x58] sm:$0xff] %v329_v11  ;;  %v333_v13 = vld [vmem:[%s2105_s25 + $0x68] sm:$0xff]  ;;  %v335_v14 = vld [vmem:[%s2105_s25 + $0x70] sm:$0xff] }
  0x19   : > { %332 = vst [vmem:[%s2110_s26 + $0x60] sm:$0xff] %v331_v12  ;;  %334 = vst [vmem:[%s2110_s26 + $0x68] sm:$0xff] %v333_v13  ;;  %v337_v15 = vld [vmem:[%s2105_s25 + $0x78] sm:$0xff]  ;;  %v339_v16 = vld [vmem:[%s2105_s25 + $0x80] sm:$0xff] }
  0x1a   : > { %336 = vst [vmem:[%s2110_s26 + $0x70] sm:$0xff] %v335_v14  ;;  %v341_v17 = vld [vmem:[%s2105_s25 + $0x88] sm:$0xff]  ;;  %338 = vst [vmem:[%s2110_s26 + $0x78] sm:$0xff] %v337_v15  ;;  %v343_v18 = vld [vmem:[%s2105_s25 + $0x120] sm:$0xff] }
  0x1b   : > { %340 = vst [vmem:[%s2110_s26 + $0x80] sm:$0xff] %v339_v16  ;;  %342 = vst [vmem:[%s2110_s26 + $0x88] sm:$0xff] %v341_v17  ;;  %v345_v19 = vld [vmem:[%s2105_s25 + $0x128] sm:$0xff]  ;;  %v347_v20 = vld [vmem:[%s2105_s25 + $0x130] sm:$0xff] }
  0x1c   : > { %344 = vst [vmem:[%s2110_s26 + $0x90] sm:$0xff] %v343_v18  ;;  %346 = vst [vmem:[%s2110_s26 + $0x98] sm:$0xff] %v345_v19  ;;  %v349_v21 = vld [vmem:[%s2105_s25 + $0x138] sm:$0xff]  ;;  %v351_v22 = vld [vmem:[%s2105_s25 + $0x140] sm:$0xff] }
  0x1d   : > { %348 = vst [vmem:[%s2110_s26 + $0xa0] sm:$0xff] %v347_v20  ;;  %v353_v23 = vld [vmem:[%s2105_s25 + $0x148] sm:$0xff]  ;;  %350 = vst [vmem:[%s2110_s26 + $0xa8] sm:$0xff] %v349_v21  ;;  %v355_v24 = vld [vmem:[%s2105_s25 + $0x150] sm:$0xff] }
  0x1e   : > { %352 = vst [vmem:[%s2110_s26 + $0xb0] sm:$0xff] %v351_v22  ;;  %354 = vst [vmem:[%s2110_s26 + $0xb8] sm:$0xff] %v353_v23  ;;  %v357_v25 = vld [vmem:[%s2105_s25 + $0x158] sm:$0xff]  ;;  %v359_v26 = vld [vmem:[%s2105_s25 + $0x160] sm:$0xff] }
  0x1f   : > { %356 = vst [vmem:[%s2110_s26 + $0xc0] sm:$0xff] %v355_v24  ;;  %358 = vst [vmem:[%s2110_s26 + $0xc8] sm:$0xff] %v357_v25  ;;  %v361_v27 = vld [vmem:[%s2105_s25 + $0x168] sm:$0xff]  ;;  %v363_v28 = vld [vmem:[%s2105_s25 + $0x170] sm:$0xff] }
  0x20   : > { %360 = vst [vmem:[%s2110_s26 + $0xd0] sm:$0xff] %v359_v26  ;;  %v365_v29 = vld [vmem:[%s2105_s25 + $0x178] sm:$0xff]  ;;  %362 = vst [vmem:[%s2110_s26 + $0xd8] sm:$0xff] %v361_v27  ;;  %v367_v30 = vld [vmem:[%s2105_s25 + $0x180] sm:$0xff] }
  0x21   : > { %364 = vst [vmem:[%s2110_s26 + $0xe0] sm:$0xff] %v363_v28  ;;  %366 = vst [vmem:[%s2110_s26 + $0xe8] sm:$0xff] %v365_v29  ;;  %v369_v31 = vld [vmem:[%s2105_s25 + $0x188] sm:$0xff]  ;;  %v371_v32 = vld [vmem:[%s2105_s25 + $0x190] sm:$0xff] }
  0x22   : > { %368 = vst [vmem:[%s2110_s26 + $0xf0] sm:$0xff] %v367_v30  ;;  %370 = vst [vmem:[%s2110_s26 + $0xf8] sm:$0xff] %v369_v31  ;;  %v373_v33 = vld [vmem:[%s2105_s25 + $0x198] sm:$0xff]  ;;  %v375_v34 = vld [vmem:[%s2105_s25 + $0x1a0] sm:$0xff] }
  0x23   : > { %372 = vst [vmem:[%s2110_s26 + $0x100] sm:$0xff] %v371_v32  ;;  %v377_v35 = vld [vmem:[%s2105_s25 + $0x1a8] sm:$0xff]  ;;  %374 = vst [vmem:[%s2110_s26 + $0x108] sm:$0xff] %v373_v33  ;;  %v379_v36 = vld [vmem:[%s2105_s25 + $0x240] sm:$0xff] }
  0x24   : > { %376 = vst [vmem:[%s2110_s26 + $0x110] sm:$0xff] %v375_v34  ;;  %378 = vst [vmem:[%s2110_s26 + $0x118] sm:$0xff] %v377_v35  ;;  %v381_v37 = vld [vmem:[%s2105_s25 + $0x248] sm:$0xff]  ;;  %v383_v38 = vld [vmem:[%s2105_s25 + $0x250] sm:$0xff] }
  0x25   : > { %380 = vst [vmem:[%s2110_s26 + $0x120] sm:$0xff] %v379_v36  ;;  %382 = vst [vmem:[%s2110_s26 + $0x128] sm:$0xff] %v381_v37  ;;  %v385_v39 = vld [vmem:[%s2105_s25 + $0x258] sm:$0xff]  ;;  %v387_v40 = vld [vmem:[%s2105_s25 + $0x260] sm:$0xff] }
  0x26   : > { %384 = vst [vmem:[%s2110_s26 + $0x130] sm:$0xff] %v383_v38  ;;  %v389_v41 = vld [vmem:[%s2105_s25 + $0x268] sm:$0xff]  ;;  %386 = vst [vmem:[%s2110_s26 + $0x138] sm:$0xff] %v385_v39  ;;  %v391_v42 = vld [vmem:[%s2105_s25 + $0x270] sm:$0xff] }
  0x27   : > { %388 = vst [vmem:[%s2110_s26 + $0x140] sm:$0xff] %v387_v40  ;;  %390 = vst [vmem:[%s2110_s26 + $0x148] sm:$0xff] %v389_v41  ;;  %v393_v43 = vld [vmem:[%s2105_s25 + $0x278] sm:$0xff]  ;;  %v395_v44 = vld [vmem:[%s2105_s25 + $0x280] sm:$0xff] }
  0x28   : > { %392 = vst [vmem:[%s2110_s26 + $0x150] sm:$0xff] %v391_v42  ;;  %394 = vst [vmem:[%s2110_s26 + $0x158] sm:$0xff] %v393_v43  ;;  %v397_v45 = vld [vmem:[%s2105_s25 + $0x288] sm:$0xff]  ;;  %v399_v46 = vld [vmem:[%s2105_s25 + $0x290] sm:$0xff] }
  0x29   : > { %396 = vst [vmem:[%s2110_s26 + $0x160] sm:$0xff] %v395_v44  ;;  %v401_v47 = vld [vmem:[%s2105_s25 + $0x298] sm:$0xff]  ;;  %398 = vst [vmem:[%s2110_s26 + $0x168] sm:$0xff] %v397_v45  ;;  %v403_v48 = vld [vmem:[%s2105_s25 + $0x2a0] sm:$0xff] }
  0x2a   : > { %400 = vst [vmem:[%s2110_s26 + $0x170] sm:$0xff] %v399_v46  ;;  %402 = vst [vmem:[%s2110_s26 + $0x178] sm:$0xff] %v401_v47  ;;  %v405_v49 = vld [vmem:[%s2105_s25 + $0x2a8] sm:$0xff]  ;;  %v407_v50 = vld [vmem:[%s2105_s25 + $0x2b0] sm:$0xff] }
  0x2b   : > { %404 = vst [vmem:[%s2110_s26 + $0x180] sm:$0xff] %v403_v48  ;;  %406 = vst [vmem:[%s2110_s26 + $0x188] sm:$0xff] %v405_v49  ;;  %v409_v51 = vld [vmem:[%s2105_s25 + $0x2b8] sm:$0xff]  ;;  %v411_v52 = vld [vmem:[%s2105_s25 + $0x2c0] sm:$0xff] }
  0x2c   : > { %408 = vst [vmem:[%s2110_s26 + $0x190] sm:$0xff] %v407_v50  ;;  %v413_v53 = vld [vmem:[%s2105_s25 + $0x2c8] sm:$0xff]  ;;  %410 = vst [vmem:[%s2110_s26 + $0x198] sm:$0xff] %v409_v51  ;;  %v415_v54 = vld [vmem:[%s2105_s25 + $0x360] sm:$0xff] }
  0x2d   : > { %412 = vst [vmem:[%s2110_s26 + $0x1a0] sm:$0xff] %v411_v52  ;;  %414 = vst [vmem:[%s2110_s26 + $0x1a8] sm:$0xff] %v413_v53  ;;  %v417_v55 = vld [vmem:[%s2105_s25 + $0x368] sm:$0xff]  ;;  %v419_v56 = vld [vmem:[%s2105_s25 + $0x370] sm:$0xff] }
  0x2e   : > { %416 = vst [vmem:[%s2110_s26 + $0x1b0] sm:$0xff] %v415_v54  ;;  %418 = vst [vmem:[%s2110_s26 + $0x1b8] sm:$0xff] %v417_v55  ;;  %v421_v57 = vld [vmem:[%s2105_s25 + $0x378] sm:$0xff]  ;;  %v423_v58 = vld [vmem:[%s2105_s25 + $0x380] sm:$0xff] }
  0x2f   : > { %420 = vst [vmem:[%s2110_s26 + $0x1c0] sm:$0xff] %v419_v56  ;;  %v425_v59 = vld [vmem:[%s2105_s25 + $0x388] sm:$0xff]  ;;  %422 = vst [vmem:[%s2110_s26 + $0x1c8] sm:$0xff] %v421_v57  ;;  %v427_v60 = vld [vmem:[%s2105_s25 + $0x390] sm:$0xff] }
  0x30   : > { %424 = vst [vmem:[%s2110_s26 + $0x1d0] sm:$0xff] %v423_v58  ;;  %426 = vst [vmem:[%s2110_s26 + $0x1d8] sm:$0xff] %v425_v59  ;;  %v429_v61 = vld [vmem:[%s2105_s25 + $0x398] sm:$0xff]  ;;  %v431_v62 = vld [vmem:[%s2105_s25 + $0x3a0] sm:$0xff] }
  0x31   : > { %428 = vst [vmem:[%s2110_s26 + $0x1e0] sm:$0xff] %v427_v60  ;;  %430 = vst [vmem:[%s2110_s26 + $0x1e8] sm:$0xff] %v429_v61  ;;  %v433_v63 = vld [vmem:[%s2105_s25 + $0x3a8] sm:$0xff]  ;;  %v435_v0 = vld [vmem:[%s2105_s25 + $0x3b0] sm:$0xff] }
  0x32   : > { %432 = vst [vmem:[%s2110_s26 + $0x1f0] sm:$0xff] %v431_v62  ;;  %v437_v1 = vld [vmem:[%s2105_s25 + $0x3b8] sm:$0xff]  ;;  %434 = vst [vmem:[%s2110_s26 + $0x1f8] sm:$0xff] %v433_v63  ;;  %v439_v2 = vld [vmem:[%s2105_s25 + $0x3c0] sm:$0xff] }
  0x33   : > { %436 = vst [vmem:[%s2110_s26 + $0x200] sm:$0xff] %v435_v0  ;;  %438 = vst [vmem:[%s2110_s26 + $0x208] sm:$0xff] %v437_v1  ;;  %v441_v3 = vld [vmem:[%s2105_s25 + $0x3c8] sm:$0xff]  ;;  %v443_v4 = vld [vmem:[%s2105_s25 + $0x3d0] sm:$0xff] }
  0x34   : > { %440 = vst [vmem:[%s2110_s26 + $0x210] sm:$0xff] %v439_v2  ;;  %442 = vst [vmem:[%s2110_s26 + $0x218] sm:$0xff] %v441_v3  ;;  %v445_v5 = vld [vmem:[%s2105_s25 + $0x3d8] sm:$0xff]  ;;  %v447_v6 = vld [vmem:[%s2105_s25 + $0x3e0] sm:$0xff] }
  0x35   : > { %444 = vst [vmem:[%s2110_s26 + $0x220] sm:$0xff] %v443_v4  ;;  %v449_v7 = vld [vmem:[%s2105_s25 + $0x3e8] sm:$0xff]  ;;  %446 = vst [vmem:[%s2110_s26 + $0x228] sm:$0xff] %v445_v5 }
  0x36   : > { %448 = vst [vmem:[%s2110_s26 + $0x230] sm:$0xff] %v447_v6  ;;  %450 = vst [vmem:[%s2110_s26 + $0x238] sm:$0xff] %v449_v7 }
  0x37 PF: > { %p1595_p5 = scmp.ge.s32.totalorder %s2048_s14, 1  ;;  %p455_p6 = scmp.lt.s32.totalorder %s2048_s14, 3 }
  0x39   : > { %p456_p7 = pnand %p1595_p5, %p455_p6 }
  0x3a   : > { %v492_v8 = vld [vmem:[%s2652_s1] sm:$0xff] (!%p456_p7)  ;;  %v493_v9 = vld [vmem:[%s2652_s1 + $0x8] sm:$0xff] (!%p456_p7)  ;;  %v494_v10 = vld [vmem:[%s2652_s1 + $0x10] sm:$0xff] (!%p456_p7)  ;;  %vm569_vm0 = vcmask (!%p456_p7), 1040384   ;;  %s462_s6 = sand.u32 (!%p456_p7), 1, %s2040_s12   ;;  %vm2050_vm1 = vmmov (!%p456_p7), 1  }
  0x3b   : > { %459 = sbr.rel (%p456_p7) target bundleno = 359 (0x167), region = 66  ;;  %v1959_v11 = vpack.c.bf16 (!%p456_p7), %v493_v9, %v492_v8  ;;  %v495_v12 = vld [vmem:[%s2652_s1 + $0x18] sm:$0x1] (!%p456_p7)  ;;  %vm2268_vm2 = vmpackc.low (!%p456_p7), %vm569_vm0, %vm2050_vm1  ;;  %vm514_vm3 = vcmask (!%p456_p7), 203776   ;;  %vm1509_vm4 = vcmask (!%p456_p7), 64512  }
  0x3c   : > { %s2000_s9 = smul.u32 (!%p456_p7), 576, %s462_s6  ;;  %v1963_v13 = vpack.c.bf16 (!%p456_p7), %v495_v12, %v494_v10 }
  0x3d   : > { %1960 = vmatprep.subr.bf16.mxu0 (!%p456_p7), %v1959_v11  ;;  %1970 = vmatprep.subr.bf16.mxu1 (!%p456_p7), %v1959_v11  ;;  %s486_s11 = smul.u32 (!%p456_p7), 18, %s1590_s15 }
  0x3e   : > { %1962 = vmatpush3.bf16.msra.mxu0 (!%p456_p7), %v1959_v11  ;;  %1972 = vmatpush3.bf16.msra.mxu1 (!%p456_p7), %v1959_v11  ;;  %s2272_s10 = scalar_lea.vmem (!%p456_p7), [#allocation2], %s2000_s9 }
  0x3f   : > { %v496_v15 = vld [vmem:[%s2272_s10] sm:$0xff] (!%p456_p7)  ;;  %v1616_v16 = vld [vmem:[%s2272_s10 + $0x90] sm:$0xff] (!%p456_p7)  ;;  %1965 = vmatprep.subr.msk.bf16.mxu0 (!%p456_p7), %vm2268_vm2, %v1963_v13  ;;  %1975 = vmatprep.subr.msk.bf16.mxu1 (!%p456_p7), %vm2268_vm2, %v1963_v13  ;;  %v497_v17 = vld [vmem:[%s2272_s10 + $0x8] sm:$0xff] (!%p456_p7)  ;;  %p487_p8 = scmp.lt.s32.totalorder (!%p456_p7), %s486_s11, 35 }
  0x40   : > { %1827 = vmatprep.mubr.msk.f32.mxu0 (!%p456_p7), %vm514_vm3, %v496_v15  ;;  %1862 = vmatprep.mubr.msk.f32.mxu1 (!%p456_p7), %vm514_vm3, %v1616_v16  ;;  %v1617_v18 = vld [vmem:[%s2272_s10 + $0x98] sm:$0xff] (!%p456_p7)  ;;  %v498_v19 = vld [vmem:[%s2272_s10 + $0x10] sm:$0xff] (!%p456_p7)  ;;  %v1618_v20 = vld [vmem:[%s2272_s10 + $0xa0] sm:$0xff] (!%p456_p7) }
  0x41   : > { %v499_v21 = vld [vmem:[%s2272_s10 + $0x18] sm:$0xff] (!%p456_p7)  ;;  %v1619_v22 = vld [vmem:[%s2272_s10 + $0xa8] sm:$0xff] (!%p456_p7)  ;;  %v500_v23 = vld [vmem:[%s2272_s10 + $0x20] sm:$0xff] (!%p456_p7) }
  0x42   : > { %1968 = vmatpush3.bf16.msk.msra.mxu0 %vm2268_vm2, %v1963_v13  ;;  %1978 = vmatpush3.bf16.msk.msra.mxu1 %vm2268_vm2, %v1963_v13  ;;  %v1620_v24 = vld [vmem:[%s2272_s10 + $0xb0] sm:$0xff]  ;;  %v501_v25 = vld [vmem:[%s2272_s10 + $0x28] sm:$0xff]  ;;  %v1621_v26 = vld [vmem:[%s2272_s10 + $0xb8] sm:$0xff]  ;;  %s2661_s11 = smov (!%p487_p8, %s486_s11), 35 }
  0x43   : > { %1980 = vmatprep.subr.bf16.mxu0 %v1959_v11  ;;  %1990 = vmatprep.subr.bf16.mxu1 %v1959_v11  ;;  %v502_v27 = vld [vmem:[%s2272_s10 + $0x30] sm:$0xff]  ;;  %v1622_v28 = vld [vmem:[%s2272_s10 + $0xc0] sm:$0xff]  ;;  %v503_v29 = vld [vmem:[%s2272_s10 + $0x38] sm:$0xff]  ;;  %s1596_s15 = sshll.u32 %s2661_s11, 3 }
  0x44   : > { %v1623_v30 = vld [vmem:[%s2272_s10 + $0xc8] sm:$0xff]  ;;  %v504_v31 = vld [vmem:[%s2272_s10 + $0x40] sm:$0xff]  ;;  %v1624_v32 = vld [vmem:[%s2272_s10 + $0xd0] sm:$0xff]  ;;  %s2541_s20 = scalar_lea.vmem %s2654_s3, %s1596_s15 }
  0x45   : > { %1828 = vmatmul.mubr.msk.f32.vlgmr.msra.gmra.mrb[0].mxu0 %vm514_vm3, %v497_v17  ;;  %1863 = vmatmul.mubr.msk.f32.vlgmr.msra.gmra.mrb[0].mxu1 %vm514_vm3, %v1617_v18  ;;  %v505_v33 = vld [vmem:[%s2272_s10 + $0x48] sm:$0xff]  ;;  %v1625_v34 = vld [vmem:[%s2272_s10 + $0xd8] sm:$0xff]  ;;  %v506_v35 = vld [vmem:[%s2272_s10 + $0x50] sm:$0xff] }
  0x46   : > { %1982 = vmatpush3.bf16.msra.mxu0 %v1959_v11  ;;  %1830 = vmatprep.mubr.msk.f32.mxu0 %vm514_vm3, %v498_v19  ;;  %v1626_v36 = vld [vmem:[%s2272_s10 + $0xe0] sm:$0xff]  ;;  %v507_v37 = vld [vmem:[%s2272_s10 + $0x58] sm:$0xff]  ;;  %v1627_v38 = vld [vmem:[%s2272_s10 + $0xe8] sm:$0xff] }
  0x47   : > { %1865 = vmatprep.mubr.msk.f32.mxu1 %vm514_vm3, %v1618_v20  ;;  %1992 = vmatpush3.bf16.msra.mxu1 %v1959_v11  ;;  %v508_v39 = vld [vmem:[%s2272_s10 + $0x60] sm:$0xff]  ;;  %v1628_v40 = vld [vmem:[%s2272_s10 + $0xf0] sm:$0xff]  ;;  %v509_v41 = vld [vmem:[%s2272_s10 + $0x68] sm:$0xff] }
  0x48   : > { %1985 = vmatprep.subr.msk.bf16.mxu0 %vm2268_vm2, %v1963_v13  ;;  %1995 = vmatprep.subr.msk.bf16.mxu1 %vm2268_vm2, %v1963_v13  ;;  %v1629_v42 = vld [vmem:[%s2272_s10 + $0xf8] sm:$0xff]  ;;  %v510_v43 = vld [vmem:[%s2272_s10 + $0x70] sm:$0xff]  ;;  %v1630_v44 = vld [vmem:[%s2272_s10 + $0x100] sm:$0xff] }
  0x49   : > { %1831 = vmatmul.mubr.msk.f32.gmra.mrb[2].mxu0 %vm514_vm3, %v499_v21  ;;  %1866 = vmatmul.mubr.msk.f32.gmra.mrb[2].mxu1 %vm514_vm3, %v1619_v22  ;;  %v511_v45 = vld [vmem:[%s2272_s10 + $0x78] sm:$0xff]  ;;  %v1631_v46 = vld [vmem:[%s2272_s10 + $0x108] sm:$0xff]  ;;  %v512_v47 = vld [vmem:[%s2272_s10 + $0x80] sm:$0xff] }
  0x4a   : > { %1833 = vmatprep.mubr.msk.f32.mxu0 %vm514_vm3, %v500_v23  ;;  %1868 = vmatprep.mubr.msk.f32.mxu1 %vm514_vm3, %v1620_v24  ;;  %v1632_v48 = vld [vmem:[%s2272_s10 + $0x110] sm:$0xff]  ;;  %v513_v49 = vld [vmem:[%s2272_s10 + $0x88] sm:$0xff]  ;;  %v1633_v50 = vld [vmem:[%s2272_s10 + $0x118] sm:$0xff] }
  0x4b   : > { %1988 = vmatpush3.bf16.msk.msra.mxu0 %vm2268_vm2, %v1963_v13  ;;  %1998 = vmatpush3.bf16.msk.msra.mxu1 %vm2268_vm2, %v1963_v13  ;;  %v1653_v51 = vld [vmem:[%s2272_s10 + $0x120] sm:$0xff]  ;;  %v1690_v52 = vld [vmem:[%s2272_s10 + $0x1b0] sm:$0xff]  ;;  %v1654_v53 = vld [vmem:[%s2272_s10 + $0x128] sm:$0xff] }
  0x4c   : > { %v1691_v54 = vld [vmem:[%s2272_s10 + $0x1b8] sm:$0xff]  ;;  %v1655_v55 = vld [vmem:[%s2272_s10 + $0x130] sm:$0xff]  ;;  %v1692_v56 = vld [vmem:[%s2272_s10 + $0x1c0] sm:$0xff] }
  0x4d   : > { %1834 = vmatmul.mubr.msk.f32.gmra.mrb[4].mxu0 %vm514_vm3, %v501_v25  ;;  %1869 = vmatmul.mubr.msk.f32.gmra.mrb[4].mxu1 %vm514_vm3, %v1621_v26  ;;  %v1656_v57 = vld [vmem:[%s2272_s10 + $0x138] sm:$0xff]  ;;  %v1693_v58 = vld [vmem:[%s2272_s10 + $0x1c8] sm:$0xff]  ;;  %v1657_v59 = vld [vmem:[%s2272_s10 + $0x140] sm:$0xff] }
  0x4e   : > { %1836 = vmatprep.mubr.msk.f32.mxu0 %vm514_vm3, %v502_v27  ;;  %1871 = vmatprep.mubr.msk.f32.mxu1 %vm514_vm3, %v1622_v28  ;;  %v1694_v60 = vld [vmem:[%s2272_s10 + $0x1d0] sm:$0xff]  ;;  %v1658_v61 = vld [vmem:[%s2272_s10 + $0x148] sm:$0xff]  ;;  %v1695_v62 = vld [vmem:[%s2272_s10 + $0x1d8] sm:$0xff] }
  0x4f   : > { %v1659_v63 = vld [vmem:[%s2272_s10 + $0x150] sm:$0xff]  ;;  %v1696_v0 = vld [vmem:[%s2272_s10 + $0x1e0] sm:$0xff]  ;;  %v1660_v1 = vld [vmem:[%s2272_s10 + $0x158] sm:$0xff] }
  0x50   : > { %v1697_v2 = vld [vmem:[%s2272_s10 + $0x1e8] sm:$0xff]  ;;  %v1661_v3 = vld [vmem:[%s2272_s10 + $0x160] sm:$0xff]  ;;  %v1698_v4 = vld [vmem:[%s2272_s10 + $0x1f0] sm:$0xff] }
  0x51   : > { %1837 = vmatmul.mubr.msk.f32.gmra.mrb[6].mxu0 %vm514_vm3, %v503_v29  ;;  %1872 = vmatmul.mubr.msk.f32.gmra.mrb[6].mxu1 %vm514_vm3, %v1623_v30  ;;  %v1662_v5 = vld [vmem:[%s2272_s10 + $0x168] sm:$0xff]  ;;  %v1699_v6 = vld [vmem:[%s2272_s10 + $0x1f8] sm:$0xff]  ;;  %v1663_v7 = vld [vmem:[%s2272_s10 + $0x170] sm:$0xff] }
  0x52   : > { %1839 = vmatprep.mubr.msk.f32.mxu0 %vm514_vm3, %v504_v31  ;;  %1874 = vmatprep.mubr.msk.f32.mxu1 %vm514_vm3, %v1624_v32  ;;  %v1700_v8 = vld [vmem:[%s2272_s10 + $0x200] sm:$0xff]  ;;  %v1664_v9 = vld [vmem:[%s2272_s10 + $0x178] sm:$0xff]  ;;  %v1701_v10 = vld [vmem:[%s2272_s10 + $0x208] sm:$0xff] }
  0x53   : > { %v1665_v11 = vld [vmem:[%s2272_s10 + $0x180] sm:$0xff]  ;;  %v1702_v12 = vld [vmem:[%s2272_s10 + $0x210] sm:$0xff]  ;;  %v1666_v13 = vld [vmem:[%s2272_s10 + $0x188] sm:$0xff] }
  0x54   : > { %v1703_v14 = vld [vmem:[%s2272_s10 + $0x218] sm:$0xff]  ;;  %v1667_v15 = vld [vmem:[%s2272_s10 + $0x190] sm:$0xff]  ;;  %v1704_v16 = vld [vmem:[%s2272_s10 + $0x220] sm:$0xff] }
  0x55   : > { %1840 = vmatmul.mubr.msk.f32.gmra.mrb[8].mxu0 %vm514_vm3, %v505_v33  ;;  %1875 = vmatmul.mubr.msk.f32.gmra.mrb[8].mxu1 %vm514_vm3, %v1625_v34  ;;  %v1668_v17 = vld [vmem:[%s2272_s10 + $0x198] sm:$0xff]  ;;  %v1705_v18 = vld [vmem:[%s2272_s10 + $0x228] sm:$0xff]  ;;  %v1669_v19 = vld [vmem:[%s2272_s10 + $0x1a0] sm:$0xff] }
  0x56   : > { %1842 = vmatprep.mubr.msk.f32.mxu0 %vm514_vm3, %v506_v35  ;;  %1877 = vmatprep.mubr.msk.f32.mxu1 %vm514_vm3, %v1626_v36  ;;  %v1706_v20 = vld [vmem:[%s2272_s10 + $0x230] sm:$0xff]  ;;  %v1670_v21 = vld [vmem:[%s2272_s10 + $0x1a8] sm:$0xff]  ;;  %v1707_v22 = vld [vmem:[%s2272_s10 + $0x238] sm:$0xff] }
  0x59   : > { %1843 = vmatmul.mubr.msk.f32.gmra.mrb[10].mxu0 %vm514_vm3, %v507_v37  ;;  %1878 = vmatmul.mubr.msk.f32.gmra.mrb[10].mxu1 %vm514_vm3, %v1627_v38 }
  0x5a   : > { %1845 = vmatprep.mubr.msk.f32.mxu0 %vm514_vm3, %v508_v39  ;;  %1880 = vmatprep.mubr.msk.f32.mxu1 %vm514_vm3, %v1628_v40 }
  0x5d   : > { %1846 = vmatmul.mubr.msk.f32.gmra.mrb[12].mxu0 %vm514_vm3, %v509_v41  ;;  %1881 = vmatmul.mubr.msk.f32.gmra.mrb[12].mxu1 %vm514_vm3, %v1629_v42 }
  0x5e   : > { %1848 = vmatprep.mubr.msk.f32.mxu0 %vm514_vm3, %v510_v43  ;;  %1883 = vmatprep.mubr.msk.f32.mxu1 %vm514_vm3, %v1630_v44 }
  0x61   : > { %1849 = vmatmul.mubr.msk.f32.gmra.mrb[14].mxu0 %vm514_vm3, %v511_v45  ;;  %1884 = vmatmul.mubr.msk.f32.gmra.mrb[14].mxu1 %vm514_vm3, %v1631_v46 }
  0x62   : > { %1851 = vmatprep.mubr.msk.f32.mxu0 %vm514_vm3, %v512_v47  ;;  %1886 = vmatprep.mubr.msk.f32.mxu1 %vm514_vm3, %v1632_v48 }
  0x65   : > { %1852 = vmatmul.mubr.msk.f32.gmra.mrb[16].mxu0 %vm514_vm3, %v513_v49  ;;  %1887 = vmatmul.mubr.msk.f32.gmra.mrb[16].mxu1 %vm514_vm3, %v1633_v50 }
  0x66   : > { %1897 = vmatprep.mubr.msk.f32.mxu0 %vm514_vm3, %v1653_v51  ;;  %1932 = vmatprep.mubr.msk.f32.mxu1 %vm514_vm3, %v1690_v52 }
  0x69   : > { %1898 = vmatmul.mubr.msk.f32.vlgmr.msra.gmra.mrb[18].mxu0 %vm514_vm3, %v1654_v53  ;;  %1933 = vmatmul.mubr.msk.f32.vlgmr.msra.gmra.mrb[18].mxu1 %vm514_vm3, %v1691_v54 }
  0x6a   : > { %1900 = vmatprep.mubr.msk.f32.mxu0 %vm514_vm3, %v1655_v55  ;;  %1935 = vmatprep.mubr.msk.f32.mxu1 %vm514_vm3, %v1692_v56 }
  0x6d   : > { %1901 = vmatmul.mubr.msk.f32.gmra.mrb[20].mxu0 %vm514_vm3, %v1656_v57  ;;  %1936 = vmatmul.mubr.msk.f32.gmra.mrb[20].mxu1 %vm514_vm3, %v1693_v58 }
  0x6e   : > { %1903 = vmatprep.mubr.msk.f32.mxu0 %vm514_vm3, %v1657_v59  ;;  %1938 = vmatprep.mubr.msk.f32.mxu1 %vm514_vm3, %v1694_v60 }
  0x71   : > { %1904 = vmatmul.mubr.msk.f32.gmra.mrb[22].mxu0 %vm514_vm3, %v1658_v61  ;;  %1939 = vmatmul.mubr.msk.f32.gmra.mrb[22].mxu1 %vm514_vm3, %v1695_v62 }
  0x72   : > { %1906 = vmatprep.mubr.msk.f32.mxu0 %vm514_vm3, %v1659_v63  ;;  %1941 = vmatprep.mubr.msk.f32.mxu1 %vm514_vm3, %v1696_v0 }
  0x75   : > { %1907 = vmatmul.mubr.msk.f32.gmra.mrb[24].mxu0 %vm514_vm3, %v1660_v1  ;;  %1942 = vmatmul.mubr.msk.f32.gmra.mrb[24].mxu1 %vm514_vm3, %v1697_v2 }
  0x76   : > { %1909 = vmatprep.mubr.msk.f32.mxu0 %vm514_vm3, %v1661_v3  ;;  %1944 = vmatprep.mubr.msk.f32.mxu1 %vm514_vm3, %v1698_v4 }
  0x79   : > { %1910 = vmatmul.mubr.msk.f32.gmra.mrb[26].mxu0 %vm514_vm3, %v1662_v5  ;;  %1945 = vmatmul.mubr.msk.f32.gmra.mrb[26].mxu1 %vm514_vm3, %v1699_v6 }
  0x7a   : > { %1912 = vmatprep.mubr.msk.f32.mxu0 %vm514_vm3, %v1663_v7  ;;  %1947 = vmatprep.mubr.msk.f32.mxu1 %vm514_vm3, %v1700_v8 }
  0x7d   : > { %1913 = vmatmul.mubr.msk.f32.gmra.mrb[28].mxu0 %vm514_vm3, %v1664_v9  ;;  %1948 = vmatmul.mubr.msk.f32.gmra.mrb[28].mxu1 %vm514_vm3, %v1701_v10 }
  0x7e   : > { %1915 = vmatprep.mubr.msk.f32.mxu0 %vm514_vm3, %v1665_v11  ;;  %1950 = vmatprep.mubr.msk.f32.mxu1 %vm514_vm3, %v1702_v12 }
  0x81   : > { %1916 = vmatmul.mubr.msk.f32.gmra.mrb[30].mxu0 %vm514_vm3, %v1666_v13  ;;  %1951 = vmatmul.mubr.msk.f32.gmra.mrb[30].mxu1 %vm514_vm3, %v1703_v14 }
  0x82   : > { %1918 = vmatprep.mubr.msk.f32.mxu0 %vm514_vm3, %v1667_v15  ;;  %1953 = vmatprep.mubr.msk.f32.mxu1 %vm514_vm3, %v1704_v16 }
  0x85   : > { %1919 = vmatmul.mubr.msk.f32.gmra.mrb[32].mxu0 %vm514_vm3, %v1668_v17  ;;  %1954 = vmatmul.mubr.msk.f32.gmra.mrb[32].mxu1 %vm514_vm3, %v1705_v18 }
  0x86   : > { %1921 = vmatprep.mubr.msk.f32.mxu0 %vm514_vm3, %v1669_v19  ;;  %1956 = vmatprep.mubr.msk.f32.mxu1 %vm514_vm3, %v1706_v20  ;;  %v2535_v19 = vld [vmem:[%s2653_s2] ss:$0 sm:$0xff] }
  0x89   : > { %1922 = vmatmul.mubr.msk.f32.gmra.mrb[34].mxu0 %vm514_vm3, %v1670_v21  ;;  %1957 = vmatmul.mubr.msk.f32.gmra.mrb[34].mxu1 %vm514_vm3, %v1707_v22 }
 0x118   : > { %v1829_v23 = vpop.f32.mrb[0].mxu0  ;;  %v1864_v24 = vpop.f32.mrb[0].mxu1 }
 0x119   : > { %v957_v25 = vmax.f32 %v1829_v23, %v1864_v24  ;;  %v639_v26 = vpop.f32.mrb[1].mxu0  ;;  %v867_v27 = vpop.f32.mrb[1].mxu1 }
 0x11a   : > { %v956_v28 = vmax.f32 %v639_v26, %v867_v27 }
 0x11c   : > { %v2434_v29 = vpop.f32.mrb[2].mxu0  ;;  %v2436_v30 = vpop.f32.mrb[2].mxu1 }
 0x11d   : > { %v959_v31 = vmax.f32 %v2434_v29, %v2436_v30  ;;  %v2440_v32 = vpop.f32.mrb[3].mxu0  ;;  %v2442_v33 = vpop.f32.mrb[3].mxu1 }
 0x11e   : > { %v958_v34 = vmax.f32 %v2440_v32, %v2442_v33 }
 0x120   : > { %v2446_v35 = vpop.f32.mrb[4].mxu0  ;;  %v2448_v36 = vpop.f32.mrb[4].mxu1 }
 0x121   : > { %v961_v37 = vmax.f32 %v2446_v35, %v2448_v36  ;;  %v2452_v38 = vpop.f32.mrb[5].mxu0  ;;  %v2454_v39 = vpop.f32.mrb[5].mxu1 }
 0x122   : > { %v960_v40 = vmax.f32 %v2452_v38, %v2454_v39 }
 0x124   : > { %v2458_v41 = vpop.f32.mrb[6].mxu0  ;;  %v2460_v42 = vpop.f32.mrb[6].mxu1 }
 0x125   : > { %v963_v43 = vmax.f32 %v2458_v41, %v2460_v42  ;;  %v2464_v44 = vpop.f32.mrb[7].mxu0  ;;  %v2466_v45 = vpop.f32.mrb[7].mxu1 }
 0x126   : > { %v962_v46 = vmax.f32 %v2464_v44, %v2466_v45 }
 0x128   : > { %v2470_v47 = vpop.f32.mrb[8].mxu0  ;;  %v2472_v48 = vpop.f32.mrb[8].mxu1 }
 0x129   : > { %v965_v49 = vmax.f32 %v2470_v47, %v2472_v48  ;;  %v2476_v50 = vpop.f32.mrb[9].mxu0  ;;  %v2478_v51 = vpop.f32.mrb[9].mxu1 }
 0x12a   : > { %v964_v52 = vmax.f32 %v2476_v50, %v2478_v51 }
 0x12c   : > { %v2482_v53 = vpop.f32.mrb[10].mxu0  ;;  %v2484_v54 = vpop.f32.mrb[10].mxu1 }
 0x12d   : > { %v967_v55 = vmax.f32 %v2482_v53, %v2484_v54  ;;  %v2488_v56 = vpop.f32.mrb[11].mxu0  ;;  %v2490_v57 = vpop.f32.mrb[11].mxu1 }
 0x12e   : > { %v966_v58 = vmax.f32 %v2488_v56, %v2490_v57 }
 0x130   : > { %v2494_v59 = vpop.f32.mrb[12].mxu0  ;;  %v2496_v60 = vpop.f32.mrb[12].mxu1 }
 0x131   : > { %v969_v61 = vmax.f32 %v2494_v59, %v2496_v60  ;;  %v2500_v62 = vpop.f32.mrb[13].mxu0  ;;  %v2502_v63 = vpop.f32.mrb[13].mxu1 }
 0x132   : > { %v968_v0 = vmax.f32 %v2500_v62, %v2502_v63 }
 0x134   : > { %v2508_v1 = vpop.f32.mrb[14].mxu0  ;;  %v2510_v2 = vpop.f32.mrb[14].mxu1 }
 0x135   : > { %v971_v3 = vmax.f32 %v2508_v1, %v2510_v2  ;;  %v2514_v4 = vpop.f32.mrb[15].mxu0  ;;  %v2516_v5 = vpop.f32.mrb[15].mxu1 }
 0x136   : > { %v970_v6 = vmax.f32 %v2514_v4, %v2516_v5 }
 0x138   : > { %v2520_v7 = vpop.f32.mrb[16].mxu0  ;;  %v2522_v8 = vpop.f32.mrb[16].mxu1 }
 0x139   : > { %v973_v9 = vmax.f32 %v2520_v7, %v2522_v8  ;;  %v2526_v10 = vpop.f32.mrb[17].mxu0  ;;  %v2528_v11 = vpop.f32.mrb[17].mxu1 }
 0x13a   : > { %v972_v12 = vmax.f32 %v2526_v10, %v2528_v11 }
 0x13c   : > { %v1899_v13 = vpop.f32.mrb[18].mxu0  ;;  %v1934_v14 = vpop.f32.mrb[18].mxu1 }
 0x13d   : > { %v1203_v15 = vmax.f32 %v957_v25, %v1899_v13  ;;  %v1113_v16 = vpop.f32.mrb[19].mxu0  ;;  %v1359_v17 = vpop.f32.mrb[19].mxu1 }
 0x13e   : > { %v1202_v18 = vmax.f32 %v956_v28, %v1113_v16 }
 0x13f   : > { %v1449_v20 = vmax.f32 %v1203_v15, %v1934_v14 }
 0x140   : > { %v1448_v21 = vmax.f32 %v1202_v18, %v1359_v17  ;;  %v1902_v22 = vpop.f32.mrb[20].mxu0  ;;  %v1937_v23 = vpop.f32.mrb[20].mxu1 }
 0x141   : > { %v1474_v24 = vadd.f32 %v2535_v19, %v1449_v20  ;;  %v1205_v26 = vmax.f32 %v959_v31, %v1902_v22  ;;  %v1123_v27 = vpop.f32.mrb[21].mxu0  ;;  %v1369_v29 = vpop.f32.mrb[21].mxu1 }
 0x142   : > { %v1473_v25 = vadd.f32 %v2535_v19, %v1448_v21  ;;  %v1204_v28 = vmax.f32 %v958_v34, %v1123_v27 }
 0x143   : > { %v1492_v30 = vmax.f32 %v1474_v24, 0.0  ;;  %v1451_v13 = vmax.f32 %v1205_v26, %v1937_v23 }
 0x144   : > { %v1491_v14 = vmax.f32 %v1473_v25, 0.0  ;;  %v1450_v31 = vmax.f32 %v1204_v28, %v1369_v29  ;;  %v1905_v15 = vpop.f32.mrb[22].mxu0  ;;  %v1940_v16 = vpop.f32.mrb[22].mxu1 }
 0x145   : > { %1511 = vst.msk [vmem:[%s2541_s20 + $0x8] sm:$0xff] %vm1509_vm4, %v1492_v30  ;;  %v1476_v17 = vadd.f32 %v2535_v19, %v1451_v13  ;;  %v1207_v18 = vmax.f32 %v961_v37, %v1905_v15  ;;  %v1133_v20 = vpop.f32.mrb[23].mxu0  ;;  %v1379_v21 = vpop.f32.mrb[23].mxu1 }
 0x146   : > { %1510 = vst.msk [vmem:[%s2541_s20] sm:$0xff] %vm1509_vm4, %v1491_v14  ;;  %v1475_v32 = vadd.f32 %v2535_v19, %v1450_v31  ;;  %v1206_v33 = vmax.f32 %v960_v40, %v1133_v20 }
 0x147   : > { %v1494_v34 = vmax.f32 %v1476_v17, 0.0  ;;  %v1453_v22 = vmax.f32 %v1207_v18, %v1940_v16 }
 0x148   : > { %v1493_v23 = vmax.f32 %v1475_v32, 0.0  ;;  %v1452_v24 = vmax.f32 %v1206_v33, %v1379_v21  ;;  %v1908_v26 = vpop.f32.mrb[24].mxu0  ;;  %v1943_v27 = vpop.f32.mrb[24].mxu1 }
 0x149   : > { %1513 = vst.msk [vmem:[%s2541_s20 + $0x18] sm:$0xff] %vm1509_vm4, %v1494_v34  ;;  %v1478_v35 = vadd.f32 %v2535_v19, %v1453_v22  ;;  %v1209_v36 = vmax.f32 %v963_v43, %v1908_v26  ;;  %v1143_v37 = vpop.f32.mrb[25].mxu0  ;;  %v1389_v29 = vpop.f32.mrb[25].mxu1 }
 0x14a   : > { %1512 = vst.msk [vmem:[%s2541_s20 + $0x10] sm:$0xff] %vm1509_vm4, %v1493_v23  ;;  %v1477_v38 = vadd.f32 %v2535_v19, %v1452_v24  ;;  %v1208_v39 = vmax.f32 %v962_v46, %v1143_v37 }
 0x14b   : > { %v1496_v40 = vmax.f32 %v1478_v35, 0.0  ;;  %v1455_v25 = vmax.f32 %v1209_v36, %v1943_v27 }
 0x14c   : > { %v1495_v28 = vmax.f32 %v1477_v38, 0.0  ;;  %v1454_v30 = vmax.f32 %v1208_v39, %v1389_v29  ;;  %v1911_v13 = vpop.f32.mrb[26].mxu0  ;;  %v1946_v14 = vpop.f32.mrb[26].mxu1 }
 0x14d   : > { %1515 = vst.msk [vmem:[%s2541_s20 + $0x28] sm:$0xff] %vm1509_vm4, %v1496_v40  ;;  %v1480_v41 = vadd.f32 %v2535_v19, %v1455_v25  ;;  %v1211_v42 = vmax.f32 %v965_v49, %v1911_v13  ;;  %v1153_v43 = vpop.f32.mrb[27].mxu0  ;;  %v1399_v31 = vpop.f32.mrb[27].mxu1 }
 0x14e   : > { %1514 = vst.msk [vmem:[%s2541_s20 + $0x20] sm:$0xff] %vm1509_vm4, %v1495_v28  ;;  %v1479_v44 = vadd.f32 %v2535_v19, %v1454_v30  ;;  %v1210_v45 = vmax.f32 %v964_v52, %v1153_v43 }
 0x14f   : > { %v1498_v46 = vmax.f32 %v1480_v41, 0.0  ;;  %v1457_v15 = vmax.f32 %v1211_v42, %v1946_v14 }
 0x150   : > { %v1497_v16 = vmax.f32 %v1479_v44, 0.0  ;;  %v1456_v17 = vmax.f32 %v1210_v45, %v1399_v31  ;;  %v1914_v18 = vpop.f32.mrb[28].mxu0  ;;  %v1949_v20 = vpop.f32.mrb[28].mxu1 }
 0x151   : > { %1517 = vst.msk [vmem:[%s2541_s20 + $0x38] sm:$0xff] %vm1509_vm4, %v1498_v46  ;;  %v1482_v47 = vadd.f32 %v2535_v19, %v1457_v15  ;;  %v1213_v48 = vmax.f32 %v967_v55, %v1914_v18  ;;  %v1163_v49 = vpop.f32.mrb[29].mxu0  ;;  %v1409_v21 = vpop.f32.mrb[29].mxu1 }
 0x152   : > { %1516 = vst.msk [vmem:[%s2541_s20 + $0x30] sm:$0xff] %vm1509_vm4, %v1497_v16  ;;  %v1481_v50 = vadd.f32 %v2535_v19, %v1456_v17  ;;  %v1212_v51 = vmax.f32 %v966_v58, %v1163_v49 }
 0x153   : > { %v1500_v52 = vmax.f32 %v1482_v47, 0.0  ;;  %v1459_v32 = vmax.f32 %v1213_v48, %v1949_v20 }
 0x154   : > { %v1499_v33 = vmax.f32 %v1481_v50, 0.0  ;;  %v1458_v34 = vmax.f32 %v1212_v51, %v1409_v21  ;;  %v1917_v22 = vpop.f32.mrb[30].mxu0  ;;  %v1952_v23 = vpop.f32.mrb[30].mxu1 }
 0x155   : > { %1519 = vst.msk [vmem:[%s2541_s20 + $0x48] sm:$0xff] %vm1509_vm4, %v1500_v52  ;;  %v1484_v53 = vadd.f32 %v2535_v19, %v1459_v32  ;;  %v1215_v54 = vmax.f32 %v969_v61, %v1917_v22  ;;  %v1173_v55 = vpop.f32.mrb[31].mxu0  ;;  %v1419_v24 = vpop.f32.mrb[31].mxu1 }
 0x156   : > { %1518 = vst.msk [vmem:[%s2541_s20 + $0x40] sm:$0xff] %vm1509_vm4, %v1499_v33  ;;  %v1483_v56 = vadd.f32 %v2535_v19, %v1458_v34  ;;  %v1214_v57 = vmax.f32 %v968_v0, %v1173_v55 }
 0x157   : > { %v1502_v58 = vmax.f32 %v1484_v53, 0.0  ;;  %v1461_v26 = vmax.f32 %v1215_v54, %v1952_v23 }
 0x158   : > { %v1501_v27 = vmax.f32 %v1483_v56, 0.0  ;;  %v1460_v35 = vmax.f32 %v1214_v57, %v1419_v24  ;;  %v1920_v36 = vpop.f32.mrb[32].mxu0  ;;  %v1955_v37 = vpop.f32.mrb[32].mxu1 }
 0x159   : > { %1521 = vst.msk [vmem:[%s2541_s20 + $0x58] sm:$0xff] %vm1509_vm4, %v1502_v58  ;;  %v1486_v59 = vadd.f32 %v2535_v19, %v1461_v26  ;;  %v1217_v60 = vmax.f32 %v971_v3, %v1920_v36  ;;  %v1183_v61 = vpop.f32.mrb[33].mxu0  ;;  %v1429_v29 = vpop.f32.mrb[33].mxu1 }
 0x15a   : > { %1520 = vst.msk [vmem:[%s2541_s20 + $0x50] sm:$0xff] %vm1509_vm4, %v1501_v27  ;;  %v1485_v62 = vadd.f32 %v2535_v19, %v1460_v35  ;;  %v1216_v63 = vmax.f32 %v970_v6, %v1183_v61 }
 0x15b   : > { %v1504_v0 = vmax.f32 %v1486_v59, 0.0  ;;  %v1463_v38 = vmax.f32 %v1217_v60, %v1955_v37 }
 0x15c   : > { %v1503_v39 = vmax.f32 %v1485_v62, 0.0  ;;  %v1462_v40 = vmax.f32 %v1216_v63, %v1429_v29  ;;  %v1923_v25 = vpop.f32.mrb[34].mxu0  ;;  %v1958_v1 = vpop.f32.mrb[34].mxu1 }
 0x15d   : > { %1523 = vst.msk [vmem:[%s2541_s20 + $0x68] sm:$0xff] %vm1509_vm4, %v1504_v0  ;;  %v1488_v2 = vadd.f32 %v2535_v19, %v1463_v38  ;;  %v1219_v3 = vmax.f32 %v973_v9, %v1923_v25  ;;  %v1193_v28 = vpop.f32.mrb[35].mxu0  ;;  %v1439_v4 = vpop.f32.mrb[35].mxu1 }
 0x15e   : > { %1522 = vst.msk [vmem:[%s2541_s20 + $0x60] sm:$0xff] %vm1509_vm4, %v1503_v39  ;;  %v1487_v5 = vadd.f32 %v2535_v19, %v1462_v40  ;;  %v1218_v6 = vmax.f32 %v972_v12, %v1193_v28 }
 0x15f   : > { %v1506_v30 = vmax.f32 %v1488_v2, 0.0  ;;  %v1465_v13 = vmax.f32 %v1219_v3, %v1958_v1 }
 0x160   : > { %v1505_v14 = vmax.f32 %v1487_v5, 0.0  ;;  %v1464_v41 = vmax.f32 %v1218_v6, %v1439_v4 }
 0x161   : > { %1525 = vst.msk [vmem:[%s2541_s20 + $0x78] sm:$0xff] %vm1509_vm4, %v1506_v30  ;;  %v1490_v7 = vadd.f32 %v2535_v19, %v1465_v13 }
 0x162   : > { %1524 = vst.msk [vmem:[%s2541_s20 + $0x70] sm:$0xff] %vm1509_vm4, %v1505_v14  ;;  %v1489_v8 = vadd.f32 %v2535_v19, %v1464_v41 }
 0x163   : > { %v1508_v9 = vmax.f32 %v1490_v7, 0.0 }
 0x164   : > { %v1507_v42 = vmax.f32 %v1489_v8, 0.0 }
 0x165   : > { %1527 = vst.msk [vmem:[%s2541_s20 + $0x88] sm:$0xff] %vm1509_vm4, %v1508_v9 }
 0x166   : > { %1526 = vst.msk [vmem:[%s2541_s20 + $0x80] sm:$0xff] %vm1509_vm4, %v1507_v42 }
 0x167 PF: > { %p10_p9 = scmp.ge.s32.totalorder %s2088_s16, 4   ;;  %s2657_s12 = smov %s2044_s13 }
 0x168   : > { %s2658_s13 = smov %s2097_s19  ;;  %s2659_s14 = smov %s2088_s16 }
 0x169   :  { %12 = sbr.rel (!%p10_p9) target bundleno = 2 (0x2), region = 108 }

// kernel: net_forward.4
= control target key start
LH: loop header
LB: loop body
LE: loop exit
PB: predicated region body
PF: predicated region fallthrough
CT: control target
= control target key end

     0   :  { %s928_s12 = smov 0   ;;  %s930_s13 = smov 0   ;;  %s1232_s0 = inlined_call_operand.vmem [shape: f32[4,32,200], index: 0, kind: input, shape index: {}]   ;;  %s1233_s1 = inlined_call_operand.vmem [shape: f32[200,48], index: 1, kind: input, shape index: {}]   ;;  %s1234_s2 = inlined_call_operand.vmem [shape: f32[1,48], index: 2, kind: input, shape index: {}]   ;;  %s1235_s3 = inlined_call_operand.vmem [shape: f32[32,48], index: 3, kind: output, shape index: {}]  }
   0x1   :  { %s932_s14 = smov 0  }
   0x2 LB: > { %s675_s15 = sadd.s32 4294967295, %s904_s14   ;;  %s945_s16 = sadd.s32 1, %s904_s14   ;;  %s904_s14 = sphi %s932_s14, %s1238_s14   ;;  %s900_s13 = sphi %s930_s13, %s1237_s13   ;;  %s896_s12 = sphi %s928_s12, %s1236_s12  }
   0x3   : > { %s17_s17 = ssub.s32 %s904_s14, %s945_s16  ;;  %s20_s18 = sadd.s32 1, %s900_s13 }
   0x4   : > { %p18_p0 = scmp.eq.s32.totalorder %s17_s17, 0  ;;  %p27_p1 = scmp.ne.s32.totalorder %s900_s13, %s896_s12 }
   0x5   : > { %p28_p2 = scmp.eq.s32.totalorder %s904_s14, 0  ;;  %p678_p4 = scmp.ge.s32.totalorder %s904_s14, 2 }
   0x6   : > { %s954_s19 = scalar_select %p18_p0, %s900_s13, %s20_s18  }
   0x7   : > { %p29_p3 = por %p28_p2, %p27_p1  ;;  %127 = sbr.rel (%p678_p4) target bundleno = 26 (0x1a), region = 24 }
   0xe   : > { %130 = sbr.rel (!%p29_p3) target bundleno = 26 (0x1a), region = 28  ;;  %s132_s20 = sand.u32 (%p29_p3), 1, %s900_s13  }
   0xf   : > { %s711_s21 = sshll.u32 (%p29_p3), %s904_s14, 5  ;;  %s679_s22 = sshll.u32 (%p29_p3), %s132_s20, 7 }
  0x10   : > { %s962_s25 = scalar_lea.vmem (%p29_p3), %s1232_s0, %s711_s21  ;;  %s134_s26 = scalar_lea.vmem (%p29_p3), [#allocation2], %s679_s22 }
  0x11   : > { %v151_v0 = vld [vmem:[%s962_s25] sm:$0xff] (%p29_p3)  ;;  %v153_v1 = vld [vmem:[%s962_s25 + $0x8] sm:$0xff] (%p29_p3)  ;;  %v155_v2 = vld [vmem:[%s962_s25 + $0x10] sm:$0xff] (%p29_p3) }
  0x12   : > { %152 = vst [vmem:[%s134_s26] sm:$0xff] (%p29_p3), %v151_v0  ;;  %154 = vst [vmem:[%s134_s26 + $0x8] sm:$0xff] (%p29_p3), %v153_v1  ;;  %v157_v3 = vld [vmem:[%s962_s25 + $0x18] sm:$0xff] (%p29_p3)  ;;  %v159_v4 = vld [vmem:[%s962_s25 + $0x40] sm:$0xff] (%p29_p3) }
  0x13   : > { %156 = vst [vmem:[%s134_s26 + $0x10] sm:$0xff] (%p29_p3), %v155_v2  ;;  %v161_v5 = vld [vmem:[%s962_s25 + $0x48] sm:$0xff] (%p29_p3)  ;;  %158 = vst [vmem:[%s134_s26 + $0x18] sm:$0xff] (%p29_p3), %v157_v3  ;;  %v163_v6 = vld [vmem:[%s962_s25 + $0x50] sm:$0xff] (%p29_p3) }
  0x14   : > { %160 = vst [vmem:[%s134_s26 + $0x20] sm:$0xff] (%p29_p3), %v159_v4  ;;  %162 = vst [vmem:[%s134_s26 + $0x28] sm:$0xff] (%p29_p3), %v161_v5  ;;  %v165_v7 = vld [vmem:[%s962_s25 + $0x58] sm:$0xff] (%p29_p3)  ;;  %v167_v8 = vld [vmem:[%s962_s25 + $0x80] sm:$0xff] (%p29_p3) }
  0x15   : > { %164 = vst [vmem:[%s134_s26 + $0x30] sm:$0xff] %v163_v6  ;;  %166 = vst [vmem:[%s134_s26 + $0x38] sm:$0xff] %v165_v7  ;;  %v169_v9 = vld [vmem:[%s962_s25 + $0x88] sm:$0xff]  ;;  %v171_v10 = vld [vmem:[%s962_s25 + $0x90] sm:$0xff] }
  0x16   : > { %168 = vst [vmem:[%s134_s26 + $0x40] sm:$0xff] %v167_v8  ;;  %v173_v11 = vld [vmem:[%s962_s25 + $0x98] sm:$0xff]  ;;  %170 = vst [vmem:[%s134_s26 + $0x48] sm:$0xff] %v169_v9  ;;  %v175_v12 = vld [vmem:[%s962_s25 + $0xc0] sm:$0xff] }
  0x17   : > { %172 = vst [vmem:[%s134_s26 + $0x50] sm:$0xff] %v171_v10  ;;  %174 = vst [vmem:[%s134_s26 + $0x58] sm:$0xff] %v173_v11  ;;  %v177_v13 = vld [vmem:[%s962_s25 + $0xc8] sm:$0xff]  ;;  %v179_v14 = vld [vmem:[%s962_s25 + $0xd0] sm:$0xff] }
  0x18   : > { %176 = vst [vmem:[%s134_s26 + $0x60] sm:$0xff] %v175_v12  ;;  %178 = vst [vmem:[%s134_s26 + $0x68] sm:$0xff] %v177_v13  ;;  %v181_v15 = vld [vmem:[%s962_s25 + $0xd8] sm:$0xff] }
  0x19   : > { %180 = vst [vmem:[%s134_s26 + $0x70] sm:$0xff] %v179_v14  ;;  %182 = vst [vmem:[%s134_s26 + $0x78] sm:$0xff] %v181_v15 }
  0x1a PF: > { %p683_p5 = scmp.ge.s32.totalorder %s904_s14, 1  ;;  %p187_p6 = scmp.lt.s32.totalorder %s904_s14, 3 }
  0x1c   : > { %p188_p7 = pnand %p683_p5, %p187_p6 }
  0x1d   : > { %v224_v16 = vld [vmem:[%s1233_s1] sm:$0xff] (!%p188_p7)  ;;  %v225_v17 = vld [vmem:[%s1233_s1 + $0x8] sm:$0xff] (!%p188_p7)  ;;  %v226_v18 = vld [vmem:[%s1233_s1 + $0x10] sm:$0xff] (!%p188_p7)  ;;  %s194_s6 = sand.u32 (!%p188_p7), 1, %s896_s12   ;;  %v906_v19 = vmov (!%p188_p7), 0.0|0.0   ;;  %vm253_vm0 = vcmask (!%p188_p7), 588800  }
  0x1e   : > { %191 = sbr.rel (%p188_p7) target bundleno = 356 (0x164), region = 51  ;;  %712 = vmatprep.subr.bf16.mxu0 (!%p188_p7), %v906_v19  ;;  %v993_v20 = vpack.c.bf16 (!%p188_p7), %v225_v17, %v224_v16  ;;  %748 = vmatprep.subr.bf16.mxu1 (!%p188_p7), %v906_v19  ;;  %v227_v21 = vld [vmem:[%s1233_s1 + $0x18] sm:$0xff] (!%p188_p7)  ;;  %s684_s9 = sshll.u32 (!%p188_p7), %s194_s6, 7  ;;  %v228_v23 = vld [vmem:[%s1233_s1 + $0x20] sm:$0xff] (!%p188_p7)  ;;  %v229_v24 = vld [vmem:[%s1233_s1 + $0x28] sm:$0xff] (!%p188_p7)  ;;  %v907_v55 = vmov (!%p188_p7), 0.0  }
  0x1f   : > { %v1001_v22 = vpack.c.bf16 (!%p188_p7), %v227_v21, %v226_v18  ;;  %v1013_v25 = vpack.c.bf16 (!%p188_p7), %v229_v24, %v228_v23  ;;  %v230_v26 = vld [vmem:[%s1233_s1 + $0x30] sm:$0xff] (!%p188_p7)  ;;  %v231_v27 = vld [vmem:[%s1233_s1 + $0x38] sm:$0xff] (!%p188_p7)  ;;  %s1023_s23 = scalar_lea.vmem (!%p188_p7), [#allocation2], %s684_s9  ;;  %v232_v31 = vld [vmem:[%s1233_s1 + $0x40] sm:$0xff] (!%p188_p7)  ;;  %s685_s10 = sshll.u32 (!%p188_p7), %s675_s15, 1  ;;  %vm610_vm1 = vcmask (!%p188_p7), 392192  }
  0x20   : > { %714 = vmatpush1.bf16.msra.mxu0 (!%p188_p7), %v993_v20  ;;  %750 = vmatpush1.bf16.msra.mxu1 (!%p188_p7), %v993_v20  ;;  %v250_v28 = vld [vmem:[%s1023_s23 + $0x8] sm:$0xff] (!%p188_p7)  ;;  %v1031_v30 = vpack.c.bf16 (!%p188_p7), %v231_v27, %v230_v26  ;;  %v234_v34 = vld [vmem:[%s1233_s1 + $0x50] sm:$0xff] (!%p188_p7)  ;;  %v235_v35 = vld [vmem:[%s1233_s1 + $0x58] sm:$0xff] (!%p188_p7)  ;;  %p219_p8 = scmp.lt.s32.totalorder (!%p188_p7), %s685_s10, 3 }
  0x21   : > { %715 = vmatprep.subr.bf16.mxu0 (!%p188_p7), %v906_v19  ;;  %751 = vmatprep.subr.bf16.mxu1 (!%p188_p7), %v906_v19  ;;  %v690_v29 = vld [vmem:[%s1023_s23 + $0x28] sm:$0xff] (!%p188_p7)  ;;  %v1055_v36 = vpack.c.bf16 (!%p188_p7), %v235_v35, %v234_v34  ;;  %v236_v37 = vld [vmem:[%s1233_s1 + $0x60] sm:$0xff] (!%p188_p7)  ;;  %v238_v40 = vld [vmem:[%s1233_s1 + $0x70] sm:$0xff] (!%p188_p7) }
  0x22   : > { %687 = vmatprep.mubr.msk.f32.mxu0 (!%p188_p7), %vm253_vm0, %v250_v28  ;;  %693 = vmatprep.mubr.msk.f32.mxu1 (!%p188_p7), %vm253_vm0, %v690_v29  ;;  %v233_v32 = vld [vmem:[%s1233_s1 + $0x48] sm:$0xff] (!%p188_p7)  ;;  %v239_v41 = vld [vmem:[%s1233_s1 + $0x78] sm:$0xff] (!%p188_p7)  ;;  %v240_v43 = vld [vmem:[%s1233_s1 + $0x80] sm:$0xff] (!%p188_p7) }
  0x23   : > { %v1043_v33 = vpack.c.bf16 (!%p188_p7), %v233_v32, %v232_v31  ;;  %v237_v38 = vld [vmem:[%s1233_s1 + $0x68] sm:$0xff] (!%p188_p7)  ;;  %v1079_v42 = vpack.c.bf16 (!%p188_p7), %v239_v41, %v238_v40  ;;  %v242_v46 = vld [vmem:[%s1233_s1 + $0x90] sm:$0xff] (!%p188_p7)  ;;  %v243_v47 = vld [vmem:[%s1233_s1 + $0x98] sm:$0xff] (!%p188_p7) }
  0x24   : > { %717 = vmatpush1.bf16.msra.mxu0 (!%p188_p7), %v1001_v22  ;;  %753 = vmatpush1.bf16.msra.mxu1 (!%p188_p7), %v1001_v22  ;;  %v1067_v39 = vpack.c.bf16 (!%p188_p7), %v237_v38, %v236_v37  ;;  %v241_v44 = vld [vmem:[%s1233_s1 + $0x88] sm:$0xff] (!%p188_p7)  ;;  %v1103_v48 = vpack.c.bf16 (!%p188_p7), %v243_v47, %v242_v46  ;;  %v244_v49 = vld [vmem:[%s1233_s1 + $0xa0] sm:$0xff] (!%p188_p7)  ;;  %v246_v52 = vld [vmem:[%s1233_s1 + $0xb0] sm:$0xff] (!%p188_p7) }
  0x25   : > { %718 = vmatprep.subr.bf16.mxu0 %v906_v19  ;;  %754 = vmatprep.subr.bf16.mxu1 %v906_v19  ;;  %v1091_v45 = vpack.c.bf16 %v241_v44, %v240_v43  ;;  %v245_v50 = vld [vmem:[%s1233_s1 + $0xa8] sm:$0xff]  ;;  %v247_v53 = vld [vmem:[%s1233_s1 + $0xb8] sm:$0xff]  ;;  %v1137_v56 = vld [vmem:[%s1233_s1 + $0xc0] sm:$0xff]  ;;  %s1240_s10 = smov (!%p219_p8, %s685_s10), 3 }
  0x26   : > { %v1115_v51 = vpack.c.bf16 %v245_v50, %v244_v49  ;;  %v1127_v54 = vpack.c.bf16 %v247_v53, %v246_v52  ;;  %v249_v57 = vld [vmem:[%s1023_s23] sm:$0xff]  ;;  %v252_v59 = vld [vmem:[%s1023_s23 + $0x18] sm:$0xff]  ;;  %v251_v60 = vld [vmem:[%s1023_s23 + $0x10] sm:$0xff]  ;;  %s686_s12 = sshll.u32 %s1240_s10, 3 }
  0x27   : > { %v689_v58 = vld [vmem:[%s1023_s23 + $0x20] sm:$0xff]  ;;  %v692_v61 = vld [vmem:[%s1023_s23 + $0x38] sm:$0xff]  ;;  %v691_v62 = vld [vmem:[%s1023_s23 + $0x30] sm:$0xff]  ;;  %s222_s15 = scalar_lea.vmem %s1235_s3, %s686_s12 }
  0x28   : > { %720 = vmatpush1.bf16.msra.mxu0 %v1013_v25  ;;  %756 = vmatpush1.bf16.msra.mxu1 %v1013_v25  ;;  %v696_v63 = vld [vmem:[%s1023_s23 + $0x48] sm:$0xff]  ;;  %v695_v1 = vld [vmem:[%s1023_s23 + $0x40] sm:$0xff]  ;;  %v698_v2 = vld [vmem:[%s1023_s23 + $0x58] sm:$0xff] }
  0x29   : > { %721 = vmatprep.subr.bf16.mxu0 %v906_v19  ;;  %757 = vmatprep.subr.bf16.mxu1 %v906_v19  ;;  %v702_v0 = vld [vmem:[%s1023_s23 + $0x68] sm:$0xff]  ;;  %v701_v3 = vld [vmem:[%s1023_s23 + $0x60] sm:$0xff]  ;;  %v704_v4 = vld [vmem:[%s1023_s23 + $0x78] sm:$0xff] }
  0x2a   : > { %v697_v5 = vld [vmem:[%s1023_s23 + $0x50] sm:$0xff]  ;;  %v707_v21 = vld [vmem:[%s1234_s2] ss:$0 sm:$0xff] }
  0x2b   : > { %v703_v6 = vld [vmem:[%s1023_s23 + $0x70] sm:$0xff] }
  0x2c   : > { %723 = vmatpush1.bf16.msra.mxu0 %v1031_v30  ;;  %759 = vmatpush1.bf16.msra.mxu1 %v1031_v30 }
  0x2d   : > { %724 = vmatprep.subr.bf16.mxu0 %v906_v19  ;;  %760 = vmatprep.subr.bf16.mxu1 %v906_v19 }
  0x30   : > { %726 = vmatpush1.bf16.msra.mxu0 %v1043_v33  ;;  %762 = vmatpush1.bf16.msra.mxu1 %v1043_v33 }
  0x31   : > { %727 = vmatprep.subr.bf16.mxu0 %v906_v19  ;;  %763 = vmatprep.subr.bf16.mxu1 %v906_v19 }
  0x34   : > { %729 = vmatpush1.bf16.msra.mxu0 %v1055_v36  ;;  %765 = vmatpush1.bf16.msra.mxu1 %v1055_v36 }
  0x35   : > { %730 = vmatprep.subr.bf16.mxu0 %v906_v19  ;;  %766 = vmatprep.subr.bf16.mxu1 %v906_v19 }
  0x38   : > { %732 = vmatpush1.bf16.msra.mxu0 %v1067_v39  ;;  %768 = vmatpush1.bf16.msra.mxu1 %v1067_v39 }
  0x39   : > { %733 = vmatprep.subr.bf16.mxu0 %v906_v19  ;;  %769 = vmatprep.subr.bf16.mxu1 %v906_v19 }
  0x3c   : > { %735 = vmatpush1.bf16.msra.mxu0 %v1079_v42  ;;  %771 = vmatpush1.bf16.msra.mxu1 %v1079_v42 }
  0x3d   : > { %736 = vmatprep.subr.bf16.mxu0 %v906_v19  ;;  %772 = vmatprep.subr.bf16.mxu1 %v906_v19 }
  0x40   : > { %738 = vmatpush1.bf16.msra.mxu0 %v1091_v45  ;;  %774 = vmatpush1.bf16.msra.mxu1 %v1091_v45 }
  0x41   : > { %739 = vmatprep.subr.bf16.mxu0 %v906_v19  ;;  %775 = vmatprep.subr.bf16.mxu1 %v906_v19 }
  0x44   : > { %741 = vmatpush1.bf16.msra.mxu0 %v1103_v48  ;;  %777 = vmatpush1.bf16.msra.mxu1 %v1103_v48 }
  0x45   : > { %742 = vmatprep.subr.bf16.mxu0 %v906_v19  ;;  %778 = vmatprep.subr.bf16.mxu1 %v906_v19 }
  0x48   : > { %744 = vmatpush1.bf16.msra.mxu0 %v1115_v51  ;;  %780 = vmatpush1.bf16.msra.mxu1 %v1115_v51 }
  0x49   : > { %745 = vmatprep.subr.bf16.mxu0 %v906_v19  ;;  %781 = vmatprep.subr.bf16.mxu1 %v906_v19 }
  0x4c   : > { %747 = vmatpush1.bf16.msra.mxu0 %v1127_v54  ;;  %783 = vmatpush1.bf16.msra.mxu1 %v1127_v54 }
  0x4d   : > { %308 = vmatprep.subr.mxu0 %v907_v55  ;;  %394 = vmatprep.subr.mxu1 %v907_v55 }
  0x50   : > { %309 = vmatpush1.msra.mxu0 %v1137_v56  ;;  %395 = vmatpush1.msra.mxu1 %v1137_v56 }
  0x51   : > { %325 = vmatmul.mubr.f32.vlgmr.msra.gmra.mrb[0].mxu0 %v249_v57  ;;  %784 = vmatprep.subr.bf16.mxu0 %v906_v19 }
  0x52   : > { %411 = vmatmul.mubr.f32.vlgmr.msra.gmra.mrb[0].mxu1 %v689_v58  ;;  %786 = vmatpush1.bf16.msra.mxu0 %v993_v20 }
  0x53   : > { %820 = vmatprep.subr.bf16.mxu1 %v906_v19  ;;  %787 = vmatprep.subr.bf16.mxu0 %v906_v19 }
  0x54   : > { %822 = vmatpush1.bf16.msra.mxu1 %v993_v20  ;;  %688 = vmatprep.mubr.msk.f32.mxu0 %vm253_vm0, %v252_v59 }
  0x55   : > { %823 = vmatprep.subr.bf16.mxu1 %v906_v19  ;;  %330 = vmatmul.mubr.f32.gmra.mrb[2].mxu0 %v251_v60 }
  0x56   : > { %789 = vmatpush1.bf16.msra.mxu0 %v1001_v22  ;;  %694 = vmatprep.mubr.msk.f32.mxu1 %vm253_vm0, %v692_v61 }
  0x57   : > { %790 = vmatprep.subr.bf16.mxu0 %v906_v19  ;;  %416 = vmatmul.mubr.f32.gmra.mrb[2].mxu1 %v691_v62 }
  0x58   : > { %825 = vmatpush1.bf16.msra.mxu1 %v1001_v22  ;;  %699 = vmatprep.mubr.msk.f32.mxu0 %vm253_vm0, %v696_v63 }
  0x59   : > { %826 = vmatprep.subr.bf16.mxu1 %v906_v19  ;;  %705 = vmatprep.mubr.msk.f32.mxu1 %vm253_vm0, %v702_v0 }
  0x5a   : > { %792 = vmatpush1.bf16.msra.mxu0 %v1013_v25 }
  0x5b   : > { %793 = vmatprep.subr.bf16.mxu0 %v906_v19 }
  0x5c   : > { %828 = vmatpush1.bf16.msra.mxu1 %v1013_v25 }
  0x5d   : > { %829 = vmatprep.subr.bf16.mxu1 %v906_v19 }
  0x5e   : > { %795 = vmatpush1.bf16.msra.mxu0 %v1031_v30 }
  0x5f   : > { %796 = vmatprep.subr.bf16.mxu0 %v906_v19 }
  0x60   : > { %831 = vmatpush1.bf16.msra.mxu1 %v1031_v30 }
  0x61   : > { %832 = vmatprep.subr.bf16.mxu1 %v906_v19 }
  0x62   : > { %798 = vmatpush1.bf16.msra.mxu0 %v1043_v33 }
  0x63   : > { %799 = vmatprep.subr.bf16.mxu0 %v906_v19 }
  0x64   : > { %834 = vmatpush1.bf16.msra.mxu1 %v1043_v33 }
  0x65   : > { %835 = vmatprep.subr.bf16.mxu1 %v906_v19 }
  0x66   : > { %801 = vmatpush1.bf16.msra.mxu0 %v1055_v36 }
  0x67   : > { %802 = vmatprep.subr.bf16.mxu0 %v906_v19 }
  0x68   : > { %837 = vmatpush1.bf16.msra.mxu1 %v1055_v36 }
  0x69   : > { %838 = vmatprep.subr.bf16.mxu1 %v906_v19 }
  0x6a   : > { %804 = vmatpush1.bf16.msra.mxu0 %v1067_v39 }
  0x6b   : > { %805 = vmatprep.subr.bf16.mxu0 %v906_v19 }
  0x6c   : > { %840 = vmatpush1.bf16.msra.mxu1 %v1067_v39 }
  0x6d   : > { %841 = vmatprep.subr.bf16.mxu1 %v906_v19 }
  0x6e   : > { %807 = vmatpush1.bf16.msra.mxu0 %v1079_v42 }
  0x6f   : > { %808 = vmatprep.subr.bf16.mxu0 %v906_v19 }
  0x70   : > { %843 = vmatpush1.bf16.msra.mxu1 %v1079_v42 }
  0x71   : > { %844 = vmatprep.subr.bf16.mxu1 %v906_v19 }
  0x72   : > { %810 = vmatpush1.bf16.msra.mxu0 %v1091_v45 }
  0x73   : > { %811 = vmatprep.subr.bf16.mxu0 %v906_v19 }
  0x74   : > { %846 = vmatpush1.bf16.msra.mxu1 %v1091_v45 }
  0x75   : > { %847 = vmatprep.subr.bf16.mxu1 %v906_v19 }
  0x76   : > { %813 = vmatpush1.bf16.msra.mxu0 %v1103_v48 }
  0x77   : > { %814 = vmatprep.subr.bf16.mxu0 %v906_v19 }
  0x78   : > { %849 = vmatpush1.bf16.msra.mxu1 %v1103_v48 }
  0x79   : > { %850 = vmatprep.subr.bf16.mxu1 %v906_v19 }
  0x7a   : > { %816 = vmatpush1.bf16.msra.mxu0 %v1115_v51 }
  0x7b   : > { %817 = vmatprep.subr.bf16.mxu0 %v906_v19 }
  0x7c   : > { %852 = vmatpush1.bf16.msra.mxu1 %v1115_v51 }
  0x7d   : > { %853 = vmatprep.subr.bf16.mxu1 %v906_v19 }
  0x7e   : > { %819 = vmatpush1.bf16.msra.mxu0 %v1127_v54 }
  0x7f   : > { %482 = vmatprep.subr.mxu0 %v907_v55 }
  0x80   : > { %855 = vmatpush1.bf16.msra.mxu1 %v1127_v54 }
  0x81   : > { %570 = vmatprep.subr.mxu1 %v907_v55 }
  0x82   : > { %483 = vmatpush1.msra.mxu0 %v1137_v56 }
  0x83   : > { %499 = vmatmul.mubr.f32.vlgmr.msra.gmra.mrb[4].mxu0 %v695_v1 }
  0x84   : > { %571 = vmatpush1.msra.mxu1 %v1137_v56  ;;  %700 = vmatprep.mubr.msk.f32.mxu0 %vm253_vm0, %v698_v2 }
  0x85   : > { %587 = vmatmul.mubr.f32.vlgmr.msra.gmra.mrb[4].mxu1 %v701_v3 }
  0x86   : > { %706 = vmatprep.mubr.msk.f32.mxu1 %vm253_vm0, %v704_v4 }
  0x87   : > { %504 = vmatmul.mubr.f32.gmra.mrb[6].mxu0 %v697_v5 }
  0x89   : > { %592 = vmatmul.mubr.f32.gmra.mrb[6].mxu1 %v703_v6 }
 0x124   : > { %v326_v7 = vpop.f32.mrb[0].mxu0 }
 0x125   : > { %v328_v8 = vpop.f32.mrb[1].mxu0  ;;  %v412_v9 = vpop.f32.mrb[0].mxu1 }
 0x126   : > { %v421_v10 = vmax.f32 %v326_v7, %v412_v9  ;;  %v414_v11 = vpop.f32.mrb[1].mxu1 }
 0x128   : > { %v331_v12 = vpop.f32.mrb[2].mxu0 }
 0x129   : > { %v333_v13 = vpop.f32.mrb[3].mxu0 }
 0x12a   : > { %v417_v14 = vpop.f32.mrb[2].mxu1 }
 0x12b   : > { %v422_v15 = vmax.f32 %v331_v12, %v417_v14  ;;  %v419_v16 = vpop.f32.mrb[3].mxu1 }
 0x156   : > { %v500_v17 = vpop.f32.mrb[4].mxu0 }
 0x157   : > { %v509_v18 = vmax.f32 %v421_v10, %v500_v17  ;;  %v502_v19 = vpop.f32.mrb[5].mxu0 }
 0x158   : > { %v588_v20 = vpop.f32.mrb[4].mxu1 }
 0x159   : > { %v597_v22 = vmax.f32 %v509_v18, %v588_v20  ;;  %v590_v23 = vpop.f32.mrb[5].mxu1 }
 0x15a   : > { %v505_v24 = vpop.f32.mrb[6].mxu0 }
 0x15b   : > { %v606_v25 = vadd.f32 %v707_v21, %v597_v22  ;;  %v510_v26 = vmax.f32 %v422_v15, %v505_v24  ;;  %v507_v27 = vpop.f32.mrb[7].mxu0 }
 0x15c   : > { %v593_v28 = vpop.f32.mrb[6].mxu1 }
 0x15d   : > { %v608_v29 = vmax.f32 %v606_v25, 0.0  ;;  %v598_v30 = vmax.f32 %v510_v26, %v593_v28  ;;  %v595_v31 = vpop.f32.mrb[7].mxu1 }
 0x15f   : > { %611 = vst.msk [vmem:[%s222_s15] sm:$0xff] %vm610_vm1, %v608_v29  ;;  %v607_v32 = vadd.f32 %v707_v21, %v598_v30 }
 0x161   : > { %v609_v33 = vmax.f32 %v607_v32, 0.0 }
 0x163   : > { %612 = vst.msk [vmem:[%s222_s15 + $0x8] sm:$0xff] %vm610_vm1, %v609_v33 }
 0x164 PF: > { %p10_p9 = scmp.ge.s32.totalorder %s945_s16, 4   ;;  %s1236_s12 = smov %s900_s13 }
 0x165   : > { %s1237_s13 = smov %s954_s19  ;;  %s1238_s14 = smov %s945_s16 }
 0x166   :  { %12 = sbr.rel (!%p10_p9) target bundleno = 2 (0x2), region = 93 }

// kernel: net_forward.5
= control target key start
LH: loop header
LB: loop body
LE: loop exit
PB: predicated region body
PF: predicated region fallthrough
CT: control target
= control target key end

     0   :  { %vm1022_vm0 = vmmov 0   ;;  %s1814_s1 = inlined_call_operand.vmem [shape: f32[768,256], index: 1, kind: input, shape index: {}]   ;;  %s1815_s0 = inlined_call_operand.vmem [shape: f32[8,768], index: 0, kind: input, shape index: {}]   ;;  %s1816_s3 = inlined_call_operand.vmem [shape: f32[256,128], index: 3, kind: input, shape index: {}]   ;;  %s1817_s2 = inlined_call_operand.vmem [shape: f32[1,256], index: 2, kind: input, shape index: {}]   ;;  %s1818_s5 = inlined_call_operand.vmem [shape: f32[128,128], index: 5, kind: input, shape index: {}]   ;;  %s1819_s4 = inlined_call_operand.vmem [shape: f32[1,128], index: 4, kind: input, shape index: {}]   ;;  %s1820_s6 = inlined_call_operand.vmem [shape: f32[1,128], index: 6, kind: input, shape index: {}]   ;;  %s1821_s7 = inlined_call_operand.vmem [shape: f32[8,128], index: 7, kind: output, shape index: {}]  }
   0x1   :  { %v97_v0 = vld [vmem:[%s1814_s1 + $0x208] sm:$0xff]  ;;  %v99_v1 = vld [vmem:[%s1814_s1 + $0x218] sm:$0xff]  ;;  %v96_v2 = vld [vmem:[%s1814_s1 + $0x200] sm:$0xff] }
   0x2   :  { %v824_v3 = vpack.c.bf16 %v99_v1, %v97_v0  ;;  %v98_v4 = vld [vmem:[%s1814_s1 + $0x210] sm:$0xff]  ;;  %v101_v5 = vld [vmem:[%s1814_s1 + $0x228] sm:$0xff]  ;;  %v103_v6 = vld [vmem:[%s1814_s1 + $0x238] sm:$0xff] }
   0x3   :  { %v826_v7 = vpack.c.bf16 %v98_v4, %v96_v2  ;;  %v828_v8 = vpack.c.bf16 %v103_v6, %v101_v5  ;;  %v100_v9 = vld [vmem:[%s1814_s1 + $0x220] sm:$0xff]  ;;  %v102_v10 = vld [vmem:[%s1814_s1 + $0x230] sm:$0xff]  ;;  %v105_v11 = vld [vmem:[%s1814_s1 + $0x248] sm:$0xff] }
   0x4   :  { %825 = vmatprep.subr.bf16.mxu0 %v824_v3  ;;  %v107_v12 = vld [vmem:[%s1814_s1 + $0x258] sm:$0xff]  ;;  %v830_v13 = vpack.c.bf16 %v102_v10, %v100_v9  ;;  %v104_v15 = vld [vmem:[%s1814_s1 + $0x240] sm:$0xff]  ;;  %v106_v16 = vld [vmem:[%s1814_s1 + $0x250] sm:$0xff] }
   0x5   :  { %827 = vmatpush1.bf16.msra.mxu0 %v826_v7  ;;  %v832_v14 = vpack.c.bf16 %v107_v12, %v105_v11  ;;  %v109_v17 = vld [vmem:[%s1814_s1 + $0x268] sm:$0xff]  ;;  %v111_v18 = vld [vmem:[%s1814_s1 + $0x278] sm:$0xff]  ;;  %v834_v19 = vpack.c.bf16 %v106_v16, %v104_v15  ;;  %v108_v21 = vld [vmem:[%s1814_s1 + $0x260] sm:$0xff] }
   0x6   :  { %829 = vmatprep.subr.bf16.mxu0 %v828_v8  ;;  %v836_v20 = vpack.c.bf16 %v111_v18, %v109_v17  ;;  %v110_v22 = vld [vmem:[%s1814_s1 + $0x270] sm:$0xff]  ;;  %v113_v23 = vld [vmem:[%s1814_s1 + $0x288] sm:$0xff]  ;;  %v115_v24 = vld [vmem:[%s1814_s1 + $0x298] sm:$0xff] }
   0x7   :  { %v838_v25 = vpack.c.bf16 %v110_v22, %v108_v21  ;;  %v840_v26 = vpack.c.bf16 %v115_v24, %v113_v23  ;;  %v112_v27 = vld [vmem:[%s1814_s1 + $0x280] sm:$0xff]  ;;  %v114_v28 = vld [vmem:[%s1814_s1 + $0x290] sm:$0xff]  ;;  %v117_v29 = vld [vmem:[%s1814_s1 + $0x2a8] sm:$0xff] }
   0x8   :  { %v119_v30 = vld [vmem:[%s1814_s1 + $0x2b8] sm:$0xff]  ;;  %v842_v31 = vpack.c.bf16 %v114_v28, %v112_v27  ;;  %v116_v33 = vld [vmem:[%s1814_s1 + $0x2a0] sm:$0xff]  ;;  %v118_v34 = vld [vmem:[%s1814_s1 + $0x2b0] sm:$0xff] }
   0x9   :  { %831 = vmatpush1.bf16.msra.mxu0 %v830_v13  ;;  %v844_v32 = vpack.c.bf16 %v119_v30, %v117_v29  ;;  %v121_v35 = vld [vmem:[%s1814_s1 + $0x2c8] sm:$0xff]  ;;  %v123_v36 = vld [vmem:[%s1814_s1 + $0x2d8] sm:$0xff]  ;;  %v846_v37 = vpack.c.bf16 %v118_v34, %v116_v33  ;;  %v120_v38 = vld [vmem:[%s1814_s1 + $0x2c0] sm:$0xff] }
   0xa   :  { %833 = vmatprep.subr.bf16.mxu0 %v832_v14  ;;  %v122_v39 = vld [vmem:[%s1814_s1 + $0x2d0] sm:$0xff]  ;;  %v33_v40 = vld [vmem:[%s1814_s1 + $0x8] sm:$0xff]  ;;  %v848_v41 = vpack.c.bf16 %v123_v36, %v121_v35  ;;  %v127_v43 = vld [vmem:[%s1814_s1 + $0x2f8] sm:$0xff] }
   0xb   :  { %v125_v42 = vld [vmem:[%s1814_s1 + $0x2e8] sm:$0xff]  ;;  %v35_v44 = vld [vmem:[%s1814_s1 + $0x18] sm:$0xff]  ;;  %v32_v46 = vld [vmem:[%s1814_s1] sm:$0xff]  ;;  %v850_v51 = vpack.c.bf16 %v122_v39, %v120_v38 }
   0xc   :  { %v760_v45 = vpack.c.bf16 %v35_v44, %v33_v40  ;;  %v34_v47 = vld [vmem:[%s1814_s1 + $0x10] sm:$0xff]  ;;  %v29_v48 = vld [vmem:[%s1815_s0 + $0x18] sm:$0xff]  ;;  %v37_v50 = vld [vmem:[%s1814_s1 + $0x28] sm:$0xff]  ;;  %v852_v54 = vpack.c.bf16 %v127_v43, %v125_v42 }
   0xd   :  { %835 = vmatpush1.bf16.msra.mxu0 %v834_v19  ;;  %v762_v49 = vpack.c.bf16 %v34_v47, %v32_v46  ;;  %371 = vmatprep.mubr.f32.mxu0 %v29_v48  ;;  %v124_v52 = vld [vmem:[%s1814_s1 + $0x2e0] sm:$0xff]  ;;  %v39_v53 = vld [vmem:[%s1814_s1 + $0x38] sm:$0xff]  ;;  %v126_v55 = vld [vmem:[%s1814_s1 + $0x2f0] sm:$0xff] }
   0xe   :  { %837 = vmatprep.subr.bf16.mxu0 %v836_v20  ;;  %761 = vmatprep.subr.bf16.mxu1 %v760_v45  ;;  %v764_v56 = vpack.c.bf16 %v39_v53, %v37_v50  ;;  %v36_v57 = vld [vmem:[%s1814_s1 + $0x20] sm:$0xff]  ;;  %v38_v58 = vld [vmem:[%s1814_s1 + $0x30] sm:$0xff]  ;;  %v129_v59 = vld [vmem:[%s1814_s1 + $0x308] sm:$0xff]  ;;  %v854_v0 = vpack.c.bf16 %v126_v55, %v124_v52 }
   0xf   :  { %763 = vmatpush1.bf16.msra.mxu1 %v762_v49  ;;  %v131_v60 = vld [vmem:[%s1814_s1 + $0x318] sm:$0xff]  ;;  %v766_v61 = vpack.c.bf16 %v38_v58, %v36_v57  ;;  %v41_v62 = vld [vmem:[%s1814_s1 + $0x48] sm:$0xff]  ;;  %v128_v1 = vld [vmem:[%s1814_s1 + $0x300] sm:$0xff] }
  0x10   :  { %765 = vmatprep.subr.bf16.mxu1 %v764_v56  ;;  %v43_v63 = vld [vmem:[%s1814_s1 + $0x58] sm:$0xff]  ;;  %v40_v3 = vld [vmem:[%s1814_s1 + $0x40] sm:$0xff]  ;;  %v42_v4 = vld [vmem:[%s1814_s1 + $0x50] sm:$0xff]  ;;  %v856_v5 = vpack.c.bf16 %v131_v60, %v129_v59 }
  0x11   :  { %839 = vmatpush1.bf16.msra.mxu0 %v838_v25  ;;  %v768_v2 = vpack.c.bf16 %v43_v63, %v41_v62  ;;  %v130_v6 = vld [vmem:[%s1814_s1 + $0x310] sm:$0xff]  ;;  %v770_v7 = vpack.c.bf16 %v42_v4, %v40_v3  ;;  %v45_v8 = vld [vmem:[%s1814_s1 + $0x68] sm:$0xff]  ;;  %v47_v9 = vld [vmem:[%s1814_s1 + $0x78] sm:$0xff] }
  0x12   :  { %841 = vmatprep.subr.bf16.mxu0 %v840_v26  ;;  %v133_v10 = vld [vmem:[%s1814_s1 + $0x328] sm:$0xff]  ;;  %v135_v11 = vld [vmem:[%s1814_s1 + $0x338] sm:$0xff]  ;;  %v772_v12 = vpack.c.bf16 %v47_v9, %v45_v8  ;;  %v44_v13 = vld [vmem:[%s1814_s1 + $0x60] sm:$0xff]  ;;  %v858_v15 = vpack.c.bf16 %v130_v6, %v128_v1 }
  0x13   :  { %767 = vmatpush1.bf16.msra.mxu1 %v766_v61  ;;  %v46_v14 = vld [vmem:[%s1814_s1 + $0x70] sm:$0xff]  ;;  %v49_v16 = vld [vmem:[%s1814_s1 + $0x88] sm:$0xff]  ;;  %v51_v17 = vld [vmem:[%s1814_s1 + $0x98] sm:$0xff]  ;;  %v860_v18 = vpack.c.bf16 %v135_v11, %v133_v10 }
  0x14   :  { %769 = vmatprep.subr.bf16.mxu1 %v768_v2  ;;  %v132_v19 = vld [vmem:[%s1814_s1 + $0x320] sm:$0xff]  ;;  %v134_v20 = vld [vmem:[%s1814_s1 + $0x330] sm:$0xff]  ;;  %v137_v21 = vld [vmem:[%s1814_s1 + $0x348] sm:$0xff]  ;;  %v774_v22 = vpack.c.bf16 %v46_v14, %v44_v13  ;;  %v776_v24 = vpack.c.bf16 %v51_v17, %v49_v16 }
  0x15   :  { %843 = vmatpush1.bf16.msra.mxu0 %v842_v31  ;;  %v139_v23 = vld [vmem:[%s1814_s1 + $0x358] sm:$0xff]  ;;  %v48_v25 = vld [vmem:[%s1814_s1 + $0x80] sm:$0xff]  ;;  %v50_v26 = vld [vmem:[%s1814_s1 + $0x90] sm:$0xff]  ;;  %v862_v29 = vpack.c.bf16 %v134_v20, %v132_v19 }
  0x16   :  { %845 = vmatprep.subr.bf16.mxu0 %v844_v32  ;;  %v53_v27 = vld [vmem:[%s1814_s1 + $0xa8] sm:$0xff]  ;;  %v55_v28 = vld [vmem:[%s1814_s1 + $0xb8] sm:$0xff]  ;;  %v864_v30 = vpack.c.bf16 %v139_v23, %v137_v21  ;;  %v136_v31 = vld [vmem:[%s1814_s1 + $0x340] sm:$0xff]  ;;  %v778_v34 = vpack.c.bf16 %v50_v26, %v48_v25 }
  0x17   :  { %771 = vmatpush1.bf16.msra.mxu1 %v770_v7  ;;  %v138_v32 = vld [vmem:[%s1814_s1 + $0x350] sm:$0xff]  ;;  %v141_v33 = vld [vmem:[%s1814_s1 + $0x368] sm:$0xff]  ;;  %v143_v35 = vld [vmem:[%s1814_s1 + $0x378] sm:$0xff]  ;;  %v780_v36 = vpack.c.bf16 %v55_v28, %v53_v27 }
  0x18   :  { %773 = vmatprep.subr.bf16.mxu1 %v772_v12  ;;  %v54_v38 = vld [vmem:[%s1814_s1 + $0xb0] sm:$0xff]  ;;  %v57_v39 = vld [vmem:[%s1814_s1 + $0xc8] sm:$0xff]  ;;  %v59_v40 = vld [vmem:[%s1814_s1 + $0xd8] sm:$0xff]  ;;  %v868_v42 = vpack.c.bf16 %v143_v35, %v141_v33 }
  0x19   :  { %847 = vmatpush1.bf16.msra.mxu0 %v846_v37  ;;  %v52_v37 = vld [vmem:[%s1814_s1 + $0xa0] sm:$0xff]  ;;  %v142_v44 = vld [vmem:[%s1814_s1 + $0x370] sm:$0xff]  ;;  %v145_v45 = vld [vmem:[%s1814_s1 + $0x388] sm:$0xff]  ;;  %v784_v48 = vpack.c.bf16 %v59_v40, %v57_v39 }
  0x1a   :  { %849 = vmatprep.subr.bf16.mxu0 %v848_v41  ;;  %v866_v41 = vpack.c.bf16 %v138_v32, %v136_v31  ;;  %v140_v43 = vld [vmem:[%s1814_s1 + $0x360] sm:$0xff]  ;;  %v782_v46 = vpack.c.bf16 %v54_v38, %v52_v37  ;;  %v147_v47 = vld [vmem:[%s1814_s1 + $0x398] sm:$0xff]  ;;  %v58_v50 = vld [vmem:[%s1814_s1 + $0xd0] sm:$0xff] }
  0x1b   :  { %775 = vmatpush1.bf16.msra.mxu1 %v774_v22  ;;  %v56_v49 = vld [vmem:[%s1814_s1 + $0xc0] sm:$0xff]  ;;  %v63_v52 = vld [vmem:[%s1814_s1 + $0xf8] sm:$0xff]  ;;  %v870_v53 = vpack.c.bf16 %v142_v44, %v140_v43  ;;  %v146_v56 = vld [vmem:[%s1814_s1 + $0x390] sm:$0xff] }
  0x1c   :  { %777 = vmatprep.subr.bf16.mxu1 %v776_v24  ;;  %v144_v55 = vld [vmem:[%s1814_s1 + $0x380] sm:$0xff]  ;;  %v149_v57 = vld [vmem:[%s1814_s1 + $0x3a8] sm:$0xff]  ;;  %v786_v58 = vpack.c.bf16 %v58_v50, %v56_v49  ;;  %v151_v59 = vld [vmem:[%s1814_s1 + $0x3b8] sm:$0xff] }
  0x1d   :  { %851 = vmatpush1.bf16.msra.mxu0 %v850_v51  ;;  %v61_v51 = vld [vmem:[%s1814_s1 + $0xe8] sm:$0xff]  ;;  %v60_v61 = vld [vmem:[%s1814_s1 + $0xe0] sm:$0xff]  ;;  %v62_v62 = vld [vmem:[%s1814_s1 + $0xf0] sm:$0xff]  ;;  %v874_v1 = vpack.c.bf16 %v146_v56, %v144_v55  ;;  %v876_v2 = vpack.c.bf16 %v151_v59, %v149_v57 }
  0x1e   :  { %853 = vmatprep.subr.bf16.mxu0 %v852_v54  ;;  %v872_v54 = vpack.c.bf16 %v147_v47, %v145_v45  ;;  %v788_v60 = vpack.c.bf16 %v63_v52, %v61_v51  ;;  %v65_v63 = vld [vmem:[%s1814_s1 + $0x108] sm:$0xff]  ;;  %v148_v3 = vld [vmem:[%s1814_s1 + $0x3a0] sm:$0xff]  ;;  %v150_v4 = vld [vmem:[%s1814_s1 + $0x3b0] sm:$0xff]  ;;  %v790_v6 = vpack.c.bf16 %v62_v62, %v60_v61 }
  0x1f   :  { %779 = vmatpush1.bf16.msra.mxu1 %v778_v34  ;;  %v155_v7 = vld [vmem:[%s1814_s1 + $0x3d8] sm:$0xff]  ;;  %v64_v9 = vld [vmem:[%s1814_s1 + $0x100] sm:$0xff]  ;;  %v66_v10 = vld [vmem:[%s1814_s1 + $0x110] sm:$0xff]  ;;  %v878_v13 = vpack.c.bf16 %v150_v4, %v148_v3 }
  0x20   :  { %781 = vmatprep.subr.bf16.mxu1 %v780_v36  ;;  %v69_v11 = vld [vmem:[%s1814_s1 + $0x128] sm:$0xff]  ;;  %v71_v12 = vld [vmem:[%s1814_s1 + $0x138] sm:$0xff]  ;;  %v154_v16 = vld [vmem:[%s1814_s1 + $0x3d0] sm:$0xff] }
  0x21   :  { %855 = vmatpush1.bf16.msra.mxu0 %v854_v0  ;;  %v67_v0 = vld [vmem:[%s1814_s1 + $0x118] sm:$0xff]  ;;  %v157_v17 = vld [vmem:[%s1814_s1 + $0x3e8] sm:$0xff]  ;;  %v796_v20 = vpack.c.bf16 %v71_v12, %v69_v11  ;;  %v68_v21 = vld [vmem:[%s1814_s1 + $0x120] sm:$0xff] }
  0x22   :  { %857 = vmatprep.subr.bf16.mxu0 %v856_v5  ;;  %v153_v5 = vld [vmem:[%s1814_s1 + $0x3c8] sm:$0xff]  ;;  %v792_v8 = vpack.c.bf16 %v67_v0, %v65_v63  ;;  %v159_v19 = vld [vmem:[%s1814_s1 + $0x3f8] sm:$0xff]  ;;  %v70_v22 = vld [vmem:[%s1814_s1 + $0x130] sm:$0xff] }
  0x23   :  { %783 = vmatpush1.bf16.msra.mxu1 %v782_v46  ;;  %v880_v14 = vpack.c.bf16 %v155_v7, %v153_v5  ;;  %v73_v23 = vld [vmem:[%s1814_s1 + $0x148] sm:$0xff]  ;;  %v75_v24 = vld [vmem:[%s1814_s1 + $0x158] sm:$0xff]  ;;  %v884_v26 = vpack.c.bf16 %v159_v19, %v157_v17  ;;  %v156_v27 = vld [vmem:[%s1814_s1 + $0x3e0] sm:$0xff] }
  0x24   :  { %785 = vmatprep.subr.bf16.mxu1 %v784_v48  ;;  %v158_v28 = vld [vmem:[%s1814_s1 + $0x3f0] sm:$0xff]  ;;  %v163_v31 = vld [vmem:[%s1814_s1 + $0x418] sm:$0xff]  ;;  %v800_v32 = vpack.c.bf16 %v75_v24, %v73_v23  ;;  %v72_v33 = vld [vmem:[%s1814_s1 + $0x140] sm:$0xff] }
  0x25   :  { %859 = vmatpush1.bf16.msra.mxu0 %v858_v15  ;;  %v152_v15 = vld [vmem:[%s1814_s1 + $0x3c0] sm:$0xff]  ;;  %v74_v34 = vld [vmem:[%s1814_s1 + $0x150] sm:$0xff]  ;;  %v77_v35 = vld [vmem:[%s1814_s1 + $0x168] sm:$0xff]  ;;  %v886_v37 = vpack.c.bf16 %v158_v28, %v156_v27 }
  0x26   :  { %861 = vmatprep.subr.bf16.mxu0 %v860_v18  ;;  %v794_v18 = vpack.c.bf16 %v66_v10, %v64_v9  ;;  %v882_v25 = vpack.c.bf16 %v154_v16, %v152_v15  ;;  %v79_v36 = vld [vmem:[%s1814_s1 + $0x178] sm:$0xff]  ;;  %v160_v39 = vld [vmem:[%s1814_s1 + $0x400] sm:$0xff]  ;;  %v162_v40 = vld [vmem:[%s1814_s1 + $0x410] sm:$0xff] }
  0x27   :  { %787 = vmatpush1.bf16.msra.mxu1 %v786_v58  ;;  %v167_v43 = vld [vmem:[%s1814_s1 + $0x438] sm:$0xff]  ;;  %v804_v44 = vpack.c.bf16 %v79_v36, %v77_v35  ;;  %v76_v45 = vld [vmem:[%s1814_s1 + $0x160] sm:$0xff]  ;;  %v78_v46 = vld [vmem:[%s1814_s1 + $0x170] sm:$0xff]  ;;  %v890_v51 = vpack.c.bf16 %v162_v40, %v160_v39 }
  0x28   :  { %789 = vmatprep.subr.bf16.mxu1 %v788_v60  ;;  %v81_v47 = vld [vmem:[%s1814_s1 + $0x188] sm:$0xff]  ;;  %v83_v48 = vld [vmem:[%s1814_s1 + $0x198] sm:$0xff]  ;;  %v28_v50 = vld [vmem:[%s1815_s0 + $0x10] sm:$0xff]  ;;  %v806_v56 = vpack.c.bf16 %v78_v46, %v76_v45 }
  0x29   :  { %863 = vmatpush1.bf16.msra.mxu0 %v862_v29  ;;  %v161_v29 = vld [vmem:[%s1814_s1 + $0x408] sm:$0xff]  ;;  %v164_v52 = vld [vmem:[%s1814_s1 + $0x420] sm:$0xff]  ;;  %v171_v58 = vld [vmem:[%s1814_s1 + $0x458] sm:$0xff]  ;;  %v808_v59 = vpack.c.bf16 %v83_v48, %v81_v47 }
  0x2a   :  { %865 = vmatprep.subr.bf16.mxu0 %v864_v30  ;;  %v798_v30 = vpack.c.bf16 %v70_v22, %v68_v21  ;;  %v888_v38 = vpack.c.bf16 %v163_v31, %v161_v29  ;;  %v27_v49 = vld [vmem:[%s1815_s0 + $0x8] sm:$0xff]  ;;  %v80_v60 = vld [vmem:[%s1814_s1 + $0x180] sm:$0xff]  ;;  %v82_v61 = vld [vmem:[%s1814_s1 + $0x190] sm:$0xff] }
  0x2b   :  { %791 = vmatpush1.bf16.msra.mxu1 %v790_v6  ;;  %300 = vmatprep.mubr.f32.mxu1 %v27_v49  ;;  %v169_v55 = vld [vmem:[%s1814_s1 + $0x448] sm:$0xff]  ;;  %v87_v63 = vld [vmem:[%s1814_s1 + $0x1b8] sm:$0xff]  ;;  %v170_v3 = vld [vmem:[%s1814_s1 + $0x450] sm:$0xff]  ;;  %v810_v5 = vpack.c.bf16 %v82_v61, %v80_v60 }
  0x2c   :  { %793 = vmatprep.subr.bf16.mxu1 %v792_v8  ;;  %v31_v57 = vld [vmem:[%s1815_s0 + $0x28] sm:$0xff]  ;;  %v175_v6 = vld [vmem:[%s1814_s1 + $0x478] sm:$0xff]  ;;  %v84_v8 = vld [vmem:[%s1814_s1 + $0x1a0] sm:$0xff] }
  0x2d   :  { %867 = vmatpush1.bf16.msra.mxu0 %v866_v41  ;;  %v165_v41 = vld [vmem:[%s1814_s1 + $0x428] sm:$0xff]  ;;  %v86_v9 = vld [vmem:[%s1814_s1 + $0x1b0] sm:$0xff]  ;;  %v91_v11 = vld [vmem:[%s1814_s1 + $0x1d8] sm:$0xff] }
  0x2e   :  { %869 = vmatprep.subr.bf16.mxu0 %v868_v42  ;;  %v802_v42 = vpack.c.bf16 %v74_v34, %v72_v33  ;;  %v85_v62 = vld [vmem:[%s1814_s1 + $0x1a8] sm:$0xff]  ;;  %v174_v15 = vld [vmem:[%s1814_s1 + $0x470] sm:$0xff]  ;;  %v814_v17 = vpack.c.bf16 %v86_v9, %v84_v8  ;;  %v95_v23 = vld [vmem:[%s1814_s1 + $0x1f8] sm:$0xff] }
  0x2f   :  { %795 = vmatpush1.bf16.msra.mxu1 %v794_v18  ;;  %v173_v4 = vld [vmem:[%s1814_s1 + $0x468] sm:$0xff]  ;;  %v812_v7 = vpack.c.bf16 %v87_v63, %v85_v62  ;;  %v179_v18 = vld [vmem:[%s1814_s1 + $0x498] sm:$0xff]  ;;  %v90_v21 = vld [vmem:[%s1814_s1 + $0x1d0] sm:$0xff] }
  0x30   :  { %797 = vmatprep.subr.bf16.mxu1 %v796_v20  ;;  %v89_v10 = vld [vmem:[%s1814_s1 + $0x1c8] sm:$0xff]  ;;  %v88_v20 = vld [vmem:[%s1814_s1 + $0x1c0] sm:$0xff]  ;;  %v178_v27 = vld [vmem:[%s1814_s1 + $0x490] sm:$0xff] }
  0x31   :  { %871 = vmatpush1.bf16.msra.mxu0 %v870_v53  ;;  %v892_v53 = vpack.c.bf16 %v167_v43, %v165_v41  ;;  %v177_v16 = vld [vmem:[%s1814_s1 + $0x488] sm:$0xff]  ;;  %v816_v19 = vpack.c.bf16 %v91_v11, %v89_v10  ;;  %v818_v29 = vpack.c.bf16 %v90_v21, %v88_v20  ;;  %v94_v33 = vld [vmem:[%s1814_s1 + $0x1f0] sm:$0xff]  ;;  %v467_v34 = vld [vmem:[%s1816_s3 + $0x80] sm:$0xff] }
  0x32   :  { %873 = vmatprep.subr.bf16.mxu0 %v872_v54  ;;  %v166_v54 = vld [vmem:[%s1814_s1 + $0x430] sm:$0xff]  ;;  %v93_v22 = vld [vmem:[%s1814_s1 + $0x1e8] sm:$0xff]  ;;  %v470_v47 = vld [vmem:[%s1816_s3 + $0x98] sm:$0xff] }
  0x33   :  { %799 = vmatpush1.bf16.msra.mxu1 %v798_v30  ;;  %v894_v0 = vpack.c.bf16 %v166_v54, %v164_v52  ;;  %v181_v28 = vld [vmem:[%s1814_s1 + $0x4a8] sm:$0xff]  ;;  %v183_v30 = vld [vmem:[%s1814_s1 + $0x4b8] sm:$0xff]  ;;  %v820_v31 = vpack.c.bf16 %v95_v23, %v93_v22  ;;  %v182_v39 = vld [vmem:[%s1814_s1 + $0x4b0] sm:$0xff] }
  0x34   :  { %801 = vmatprep.subr.bf16.mxu1 %v800_v32  ;;  %v92_v32 = vld [vmem:[%s1814_s1 + $0x1e0] sm:$0xff]  ;;  %v468_v35 = vld [vmem:[%s1816_s3 + $0x88] sm:$0xff]  ;;  %v469_v46 = vld [vmem:[%s1816_s3 + $0x90] sm:$0xff] }
  0x35   :  { %875 = vmatpush1.bf16.msra.mxu0 %v874_v1  ;;  %v896_v1 = vpack.c.bf16 %v171_v58, %v169_v55  ;;  %v185_v40 = vld [vmem:[%s1814_s1 + $0x4c8] sm:$0xff]  ;;  %v822_v41 = vpack.c.bf16 %v94_v33, %v92_v32  ;;  %v952_v43 = vpack.c.bf16 %v468_v35, %v467_v34  ;;  %v184_v49 = vld [vmem:[%s1814_s1 + $0x4c0] sm:$0xff]  ;;  %v191_v55 = vld [vmem:[%s1814_s1 + $0x4f8] sm:$0xff] }
  0x36   :  { %877 = vmatprep.subr.bf16.mxu0 %v876_v2  ;;  %v168_v2 = vld [vmem:[%s1814_s1 + $0x440] sm:$0xff]  ;;  %v452_v45 = vld [vmem:[%s1816_s3 + $0x8] sm:$0xff]  ;;  %v454_v58 = vld [vmem:[%s1816_s3 + $0x18] sm:$0xff] }
  0x37   :  { %803 = vmatpush1.bf16.msra.mxu1 %v802_v42  ;;  %v898_v12 = vpack.c.bf16 %v170_v3, %v168_v2  ;;  %v187_v42 = vld [vmem:[%s1814_s1 + $0x4d8] sm:$0xff]  ;;  %v189_v52 = vld [vmem:[%s1814_s1 + $0x4e8] sm:$0xff]  ;;  %v188_v63 = vld [vmem:[%s1814_s1 + $0x4e0] sm:$0xff] }
  0x38   :  { %805 = vmatprep.subr.bf16.mxu1 %v804_v44  ;;  %v451_v44 = vld [vmem:[%s1816_s3] sm:$0xff]  ;;  %v472_v60 = vld [vmem:[%s1816_s3 + $0xa8] sm:$0xff]  ;;  %v916_v62 = vpack.c.bf16 %v191_v55, %v189_v52  ;;  %v195_v3 = vld [vmem:[%s1814_s1 + $0x518] sm:$0xff] }
  0x39   :  { %879 = vmatpush1.bf16.msra.mxu0 %v878_v13  ;;  %v900_v13 = vpack.c.bf16 %v175_v6, %v173_v4  ;;  %v954_v54 = vpack.c.bf16 %v452_v45, %v451_v44  ;;  %v456_v6 = vld [vmem:[%s1816_s3 + $0x28] sm:$0xff]  ;;  %v474_v8 = vld [vmem:[%s1816_s3 + $0xb8] sm:$0xff]  ;;  %v192_v11 = vld [vmem:[%s1814_s1 + $0x500] sm:$0xff] }
  0x3a   :  { %881 = vmatprep.subr.bf16.mxu0 %v880_v14  ;;  %v172_v14 = vld [vmem:[%s1814_s1 + $0x460] sm:$0xff]  ;;  %v476_v20 = vld [vmem:[%s1816_s3 + $0xc8] sm:$0xff]  ;;  %v478_v32 = vld [vmem:[%s1816_s3 + $0xd8] sm:$0xff] }
  0x3b   :  { %807 = vmatpush1.bf16.msra.mxu1 %v806_v56  ;;  %v902_v24 = vpack.c.bf16 %v174_v15, %v172_v14  ;;  %v956_v56 = vpack.c.bf16 %v470_v47, %v469_v46  ;;  %v199_v15 = vld [vmem:[%s1814_s1 + $0x538] sm:$0xff]  ;;  %v196_v23 = vld [vmem:[%s1814_s1 + $0x520] sm:$0xff]  ;;  %v206_v46 = vld [vmem:[%s1814_s1 + $0x570] sm:$0xff] }
  0x3c   :  { %809 = vmatprep.subr.bf16.mxu1 %v808_v59  ;;  %v471_v59 = vld [vmem:[%s1816_s3 + $0xa0] sm:$0xff]  ;;  %v215_v55 = vld [vmem:[%s1814_s1 + $0x5b8] sm:$0xff] }
  0x3d   :  { %883 = vmatpush1.bf16.msra.mxu0 %v882_v25  ;;  %v904_v25 = vpack.c.bf16 %v179_v18, %v177_v16  ;;  %v960_v4 = vpack.c.bf16 %v472_v60, %v471_v59  ;;  %v458_v18 = vld [vmem:[%s1816_s3 + $0x38] sm:$0xff]  ;;  %v200_v35 = vld [vmem:[%s1814_s1 + $0x540] sm:$0xff]  ;;  %v214_v59 = vld [vmem:[%s1814_s1 + $0x5b0] sm:$0xff] }
  0x3e   :  { %885 = vmatprep.subr.bf16.mxu0 %v884_v26  ;;  %v176_v26 = vld [vmem:[%s1814_s1 + $0x480] sm:$0xff]  ;;  %v217_v60 = vld [vmem:[%s1814_s1 + $0x5c8] sm:$0xff] }
  0x3f   :  { %811 = vmatpush1.bf16.msra.mxu1 %v810_v5  ;;  %v906_v36 = vpack.c.bf16 %v178_v27, %v176_v26  ;;  %v455_v5 = vld [vmem:[%s1816_s3 + $0x20] sm:$0xff]  ;;  %v203_v27 = vld [vmem:[%s1814_s1 + $0x558] sm:$0xff] }
  0x40   :  { %813 = vmatprep.subr.bf16.mxu1 %v812_v7  ;;  %v473_v7 = vld [vmem:[%s1816_s3 + $0xb0] sm:$0xff]  ;;  %v962_v14 = vpack.c.bf16 %v456_v6, %v455_v5  ;;  %v204_v45 = vld [vmem:[%s1814_s1 + $0x560] sm:$0xff] }
  0x41   :  { %887 = vmatpush1.bf16.msra.mxu0 %v886_v37  ;;  %v908_v37 = vpack.c.bf16 %v183_v30, %v181_v28  ;;  %v964_v16 = vpack.c.bf16 %v474_v8, %v473_v7  ;;  %v460_v30 = vld [vmem:[%s1816_s3 + $0x48] sm:$0xff]  ;;  %v208_v52 = vld [vmem:[%s1814_s1 + $0x580] sm:$0xff]  ;;  %v222_v7 = vld [vmem:[%s1814_s1 + $0x5f0] sm:$0xff] }
  0x42   :  { %889 = vmatprep.subr.bf16.mxu0 %v888_v38  ;;  %v180_v38 = vld [vmem:[%s1814_s1 + $0x4a0] sm:$0xff] }
  0x43   :  { %815 = vmatpush1.bf16.msra.mxu1 %v814_v17  ;;  %v910_v48 = vpack.c.bf16 %v182_v39, %v180_v38  ;;  %v457_v17 = vld [vmem:[%s1816_s3 + $0x30] sm:$0xff]  ;;  %v207_v39 = vld [vmem:[%s1814_s1 + $0x578] sm:$0xff]  ;;  %v220_v6 = vld [vmem:[%s1814_s1 + $0x5e0] sm:$0xff] }
  0x44   :  { %372 = vmatmul.mubr.f32.vlgmr.msra.gmra.mrb[0].mxu0 %v28_v50  ;;  %817 = vmatprep.subr.bf16.mxu1 %v816_v19  ;;  %v912_v50 = vpack.c.bf16 %v187_v42, %v185_v40  ;;  %v475_v19 = vld [vmem:[%s1816_s3 + $0xc0] sm:$0xff]  ;;  %v966_v26 = vpack.c.bf16 %v458_v18, %v457_v17  ;;  %v462_v42 = vld [vmem:[%s1816_s3 + $0x58] sm:$0xff]  ;;  %v950_v8 = vpack.c.bf16 %v222_v7, %v220_v6 }
  0x45   :  { %891 = vmatpush1.bf16.msra.mxu0 %v890_v51  ;;  %442 = vmatprep.mubr.f32.mxu0 %v31_v57  ;;  %v186_v51 = vld [vmem:[%s1814_s1 + $0x4d0] sm:$0xff]  ;;  %v968_v28 = vpack.c.bf16 %v476_v20, %v475_v19  ;;  %v482_v17 = vld [vmem:[%s1816_s3 + $0xf8] sm:$0xff]  ;;  %v672_v7 = vld [vmem:[%s1820_s6] ss:$0 sm:$0xff] }
  0x46   :  { %893 = vmatprep.subr.bf16.mxu0 %v892_v53  ;;  %v26_v53 = vld [vmem:[%s1815_s0] sm:$0xff]  ;;  %v453_v57 = vld [vmem:[%s1816_s3 + $0x10] sm:$0xff]  ;;  %v914_v61 = vpack.c.bf16 %v186_v51, %v184_v49  ;;  %v211_v49 = vld [vmem:[%s1814_s1 + $0x598] sm:$0xff] }
  0x47   :  { %819 = vmatpush1.bf16.msra.mxu1 %v818_v29  ;;  %v958_v2 = vpack.c.bf16 %v454_v58, %v453_v57  ;;  %v459_v29 = vld [vmem:[%s1816_s3 + $0x40] sm:$0xff]  ;;  %v465_v19 = vld [vmem:[%s1816_s3 + $0x70] sm:$0xff]  ;;  %v466_v20 = vld [vmem:[%s1816_s3 + $0x78] sm:$0xff] }
  0x48   :  { %821 = vmatprep.subr.bf16.mxu1 %v820_v31  ;;  %v477_v31 = vld [vmem:[%s1816_s3 + $0xd0] sm:$0xff]  ;;  %v970_v38 = vpack.c.bf16 %v460_v30, %v459_v29  ;;  %v212_v58 = vld [vmem:[%s1814_s1 + $0x5a0] sm:$0xff] }
  0x49   :  { %895 = vmatpush1.bf16.msra.mxu0 %v894_v0  ;;  %v190_v0 = vld [vmem:[%s1814_s1 + $0x4f0] sm:$0xff]  ;;  %v972_v40 = vpack.c.bf16 %v478_v32, %v477_v31 }
  0x4a   :  { %897 = vmatprep.subr.bf16.mxu0 %v896_v1  ;;  %v193_v1 = vld [vmem:[%s1814_s1 + $0x508] sm:$0xff]  ;;  %v918_v9 = vpack.c.bf16 %v190_v0, %v188_v63  ;;  %v216_v0 = vld [vmem:[%s1814_s1 + $0x5c0] sm:$0xff] }
  0x4b   :  { %823 = vmatpush1.bf16.msra.mxu1 %v822_v41  ;;  %v920_v10 = vpack.c.bf16 %v195_v3, %v193_v1  ;;  %v461_v41 = vld [vmem:[%s1816_s3 + $0x50] sm:$0xff]  ;;  %v223_v3 = vld [vmem:[%s1814_s1 + $0x5f8] sm:$0xff] }
  0x4c   :  { %953 = vmatprep.subr.bf16.mxu1 %v952_v43  ;;  %v974_v47 = vpack.c.bf16 %v462_v42, %v461_v41  ;;  %v218_v1 = vld [vmem:[%s1814_s1 + $0x5d0] sm:$0xff] }
  0x4d   :  { %899 = vmatpush1.bf16.msra.mxu0 %v898_v12  ;;  %v194_v12 = vld [vmem:[%s1814_s1 + $0x510] sm:$0xff] }
  0x4e   :  { %901 = vmatprep.subr.bf16.mxu0 %v900_v13  ;;  %301 = vmatmul.mubr.f32.vlgmr.msra.gmra.mrb[0].mxu1 %v26_v53  ;;  %v197_v13 = vld [vmem:[%s1814_s1 + $0x528] sm:$0xff]  ;;  %v922_v21 = vpack.c.bf16 %v194_v12, %v192_v11  ;;  %v210_v53 = vld [vmem:[%s1814_s1 + $0x590] sm:$0xff] }
  0x4f   :  { %955 = vmatpush3.bf16.msra.mxu1 %v954_v54  ;;  %v924_v22 = vpack.c.bf16 %v199_v15, %v197_v13  ;;  %v213_v54 = vld [vmem:[%s1814_s1 + $0x5a8] sm:$0xff]  ;;  %v463_v13 = vld [vmem:[%s1816_s3 + $0x60] sm:$0xff] }
  0x50   :  { %957 = vmatprep.subr.bf16.mxu1 %v956_v56  ;;  %v938_v56 = vpack.c.bf16 %v210_v53, %v208_v52  ;;  %v940_v57 = vpack.c.bf16 %v215_v55, %v213_v54  ;;  %v480_v11 = vld [vmem:[%s1816_s3 + $0xe8] sm:$0xff]  ;;  %v569_v52 = vld [vmem:[%s1818_s5 + $0x40] sm:$0xff]  ;;  %v571_v55 = vld [vmem:[%s1818_s5 + $0x50] sm:$0xff] }
  0x51   :  { %903 = vmatpush1.bf16.msra.mxu0 %v902_v24  ;;  %v198_v24 = vld [vmem:[%s1814_s1 + $0x530] sm:$0xff]  ;;  %v570_v53 = vld [vmem:[%s1818_s5 + $0x48] sm:$0xff] }
  0x52   :  { %905 = vmatprep.subr.bf16.mxu0 %v904_v25  ;;  %v201_v25 = vld [vmem:[%s1814_s1 + $0x548] sm:$0xff]  ;;  %v926_v33 = vpack.c.bf16 %v198_v24, %v196_v23  ;;  %v997_v54 = vpack.c.bf16 %v570_v53, %v569_v52 }
  0x53   :  { %959 = vmatpush3.bf16.msra.mxu1 %v958_v2  ;;  %v928_v34 = vpack.c.bf16 %v203_v27, %v201_v25  ;;  %v221_v2 = vld [vmem:[%s1814_s1 + $0x5e8] sm:$0xff]  ;;  %v226_v25 = vlaneseq }
  0x54   :  { %961 = vmatprep.subr.bf16.mxu1 %v960_v4  ;;  %v946_v4 = vpack.c.bf16 %v218_v1, %v216_v0  ;;  %v948_v5 = vpack.c.bf16 %v223_v3, %v221_v2  ;;  %v1023_v0 = vmov 0.0   ;;  %v671_v2 = vld [vmem:[%s1819_s4] ss:$0 sm:$0xff] }
  0x55   :  { %907 = vmatpush1.bf16.msra.mxu0 %v906_v36  ;;  %v202_v36 = vld [vmem:[%s1814_s1 + $0x550] sm:$0xff] }
  0x56   :  { %909 = vmatprep.subr.bf16.mxu0 %v908_v37  ;;  %v205_v37 = vld [vmem:[%s1814_s1 + $0x568] sm:$0xff]  ;;  %v930_v43 = vpack.c.bf16 %v202_v36, %v200_v35 }
  0x57   :  { %963 = vmatpush3.bf16.msra.mxu1 %v962_v14  ;;  %v932_v44 = vpack.c.bf16 %v207_v39, %v205_v37  ;;  %v464_v14 = vld [vmem:[%s1816_s3 + $0x68] sm:$0xff]  ;;  %v561_v37 = vld [vmem:[%s1818_s5] sm:$0xff] }
  0x58   :  { %965 = vmatprep.subr.bf16.mxu1 %v964_v16  ;;  %v978_v15 = vpack.c.bf16 %v464_v14, %v463_v13  ;;  %v481_v16 = vld [vmem:[%s1816_s3 + $0xf0] sm:$0xff] }
  0x59   :  { %911 = vmatpush1.bf16.msra.mxu0 %v910_v48  ;;  %v209_v48 = vld [vmem:[%s1814_s1 + $0x588] sm:$0xff]  ;;  %v980_v18 = vpack.c.bf16 %v482_v17, %v481_v16 }
  0x5a   :  { %913 = vmatprep.subr.bf16.mxu0 %v912_v50  ;;  %v934_v50 = vpack.c.bf16 %v206_v46, %v204_v45  ;;  %v936_v51 = vpack.c.bf16 %v211_v49, %v209_v48  ;;  %v565_v46 = vld [vmem:[%s1818_s5 + $0x20] sm:$0xff]  ;;  %v567_v49 = vld [vmem:[%s1818_s5 + $0x30] sm:$0xff] }
  0x5b   :  { %967 = vmatpush3.bf16.msra.mxu1 %v966_v26  ;;  %v227_v26 = vshrl.u32 %v226_v25, 7 }
  0x5c   :  { %969 = vmatprep.subr.bf16.mxu1 %v968_v28  ;;  %v224_v28 = vld [vmem:[%s1817_s2] sm:$0x3] }
  0x5d   :  { %915 = vmatpush1.bf16.msra.mxu0 %v914_v61  ;;  %v219_v61 = vld [vmem:[%s1814_s1 + $0x5d8] sm:$0xff]  ;;  %v228_v27 = vsub.s32 0, %v227_v26  ;;  %v232_v29 = vsub.s32 1, %v227_v26 }
  0x5e   :  { %917 = vmatprep.subr.bf16.mxu0 %v916_v62  ;;  %v942_v62 = vpack.c.bf16 %v214_v59, %v212_v58  ;;  %v944_v63 = vpack.c.bf16 %v219_v61, %v217_v60  ;;  %v573_v58 = vld [vmem:[%s1818_s5 + $0x60] sm:$0xff]  ;;  %v574_v59 = vld [vmem:[%s1818_s5 + $0x68] sm:$0xff]  ;;  %v575_v61 = vld [vmem:[%s1818_s5 + $0x70] sm:$0xff] }
  0x5f   :  { %971 = vmatpush3.bf16.msra.mxu1 %v970_v38  ;;  %v229_v30 = vrot.slane %v224_v28, %v228_v27  ;;  %v233_v31 = vrot.slane %v224_v28, %v232_v29  ;;  %v562_v38 = vld [vmem:[%s1818_s5 + $0x8] sm:$0xff]  ;;  %v1003_v60 = vpack.c.bf16 %v574_v59, %v573_v58 }
  0x60   :  { %973 = vmatprep.subr.bf16.mxu1 %v972_v40  ;;  %v985_v41 = vpack.c.bf16 %v562_v38, %v561_v37 }
  0x61   :  { %919 = vmatpush1.bf16.msra.mxu0 %v918_v9  ;;  %v30_v9 = vld [vmem:[%s1815_s0 + $0x20] sm:$0xff] }
  0x62   :  { %921 = vmatprep.subr.bf16.mxu0 %v920_v10  ;;  %v479_v10 = vld [vmem:[%s1816_s3 + $0xe0] sm:$0xff] }
  0x63   :  { %975 = vmatpush3.bf16.msra.mxu1 %v974_v47  ;;  %v976_v12 = vpack.c.bf16 %v480_v11, %v479_v10  ;;  %v566_v47 = vld [vmem:[%s1818_s5 + $0x28] sm:$0xff] }
  0x64   :  { %v991_v48 = vpack.c.bf16 %v566_v47, %v565_v46 }
  0x65   :  { %923 = vmatpush1.bf16.msra.mxu0 %v922_v21  ;;  %977 = vmatprep.subr.bf16.mxu1 %v976_v12  ;;  %v982_v21 = vpack.c.bf16 %v466_v20, %v465_v19 }
  0x66   :  { %925 = vmatprep.subr.bf16.mxu0 %v924_v22  ;;  %v1021_v22 = vmov 0.0|0.0  }
  0x67   :  { %979 = vmatpush3.bf16.msra.mxu1 %v978_v15 }
  0x68   :  { %981 = vmatprep.subr.bf16.mxu1 %v980_v18 }
  0x69   :  { %927 = vmatpush1.bf16.msra.mxu0 %v926_v33 }
  0x6a   :  { %929 = vmatprep.subr.bf16.mxu0 %v928_v34 }
  0x6b   :  { %983 = vmatpush3.bf16.msra.mxu1 %v982_v21 }
  0x6c   :  { %984 = vmatprep.subr.bf16.mxu1 %v1021_v22 }
  0x6d   :  { %931 = vmatpush1.bf16.msra.mxu0 %v930_v43  ;;  %v563_v43 = vld [vmem:[%s1818_s5 + $0x10] sm:$0xff] }
  0x6e   :  { %933 = vmatprep.subr.bf16.mxu0 %v932_v44  ;;  %v564_v44 = vld [vmem:[%s1818_s5 + $0x18] sm:$0xff] }
  0x6f   :  { %v988_v45 = vpack.c.bf16 %v564_v44, %v563_v43 }
  0x71   :  { %935 = vmatpush1.bf16.msra.mxu0 %v934_v50  ;;  %v568_v50 = vld [vmem:[%s1818_s5 + $0x38] sm:$0xff] }
  0x72   :  { %937 = vmatprep.subr.bf16.mxu0 %v936_v51  ;;  %v994_v51 = vpack.c.bf16 %v568_v50, %v567_v49 }
  0x75   :  { %939 = vmatpush1.bf16.msra.mxu0 %v938_v56  ;;  %v572_v56 = vld [vmem:[%s1818_s5 + $0x58] sm:$0xff] }
  0x76   :  { %941 = vmatprep.subr.bf16.mxu0 %v940_v57  ;;  %v1000_v57 = vpack.c.bf16 %v572_v56, %v571_v55 }
  0x79   :  { %943 = vmatpush1.bf16.msra.mxu0 %v942_v62  ;;  %v576_v62 = vld [vmem:[%s1818_s5 + $0x78] sm:$0xff] }
  0x7a   :  { %945 = vmatprep.subr.bf16.mxu0 %v944_v63  ;;  %v1006_v63 = vpack.c.bf16 %v576_v62, %v575_v61 }
  0x7d   :  { %947 = vmatpush1.bf16.msra.mxu0 %v946_v4 }
  0x7e   :  { %949 = vmatprep.subr.bf16.mxu0 %v948_v5 }
  0x81   :  { %951 = vmatpush1.bf16.msra.mxu0 %v950_v8 }
  0x84   :  { %443 = vmatmul.mubr.f32.vlgmr.msra.gmra.mrb[0].mxu0 %v30_v9 }
 0x121   :  { %v302_v23 = vpop.f32.mrb[0].mxu1 }
 0x122   :  { %v304_v24 = vpop.f32.mrb[1].mxu1  ;;  %v303_v32 = vadd.f32 %v302_v23, %v229_v30 }
 0x123   :  { %v305_v33 = vadd.f32 %v304_v24, %v233_v31 }
 0x157   :  { %v444_v34 = vpop.f32.mrb[0].mxu0 }
 0x158   :  { %v1009_v35 = vadd.f32 %v444_v34, %v303_v32  ;;  %v446_v36 = vpop.f32.mrb[1].mxu0 }
 0x159   :  { %v1011_v39 = vadd.f32 %v446_v36, %v305_v33 }
 0x15a   :  { %v449_v42 = vmax.f32 %v1009_v35, 0.0 }
 0x15b   :  { %v450_v40 = vmax.f32 %v1011_v39, 0.0 }
 0x15d   :  { %554 = vmatprep.mubr.f32.mxu1 %v450_v40 }
 0x15e   :  { %555 = vmatmul.mubr.f32.vlgmr.msra.gmra.mrb[2].mxu1 %v449_v42 }
 0x15f   :  { %986 = vmatpush3.bf16.msra.mxu1 %v985_v41  ;;  %757 = vmatprep.mubr.msk.f32.mxu1 %vm1022_vm0, %v1023_v0 }
 0x160   :  { %987 = vmatprep.subr.bf16.mxu1 %v1021_v22 }
 0x163   :  { %989 = vmatpush3.bf16.msra.mxu1 %v988_v45 }
 0x164   :  { %990 = vmatprep.subr.bf16.mxu1 %v1021_v22 }
 0x167   :  { %992 = vmatpush3.bf16.msra.mxu1 %v991_v48 }
 0x168   :  { %993 = vmatprep.subr.bf16.mxu1 %v1021_v22 }
 0x16b   :  { %995 = vmatpush3.bf16.msra.mxu1 %v994_v51 }
 0x16c   :  { %996 = vmatprep.subr.bf16.mxu1 %v1021_v22 }
 0x16f   :  { %998 = vmatpush3.bf16.msra.mxu1 %v997_v54 }
 0x170   :  { %999 = vmatprep.subr.bf16.mxu1 %v1021_v22 }
 0x173   :  { %1001 = vmatpush3.bf16.msra.mxu1 %v1000_v57 }
 0x174   :  { %1002 = vmatprep.subr.bf16.mxu1 %v1021_v22 }
 0x177   :  { %1004 = vmatpush3.bf16.msra.mxu1 %v1003_v60 }
 0x178   :  { %1005 = vmatprep.subr.bf16.mxu1 %v1021_v22 }
 0x17b   :  { %1007 = vmatpush3.bf16.msra.mxu1 %v1006_v63 }
 0x231   :  { %v705_v1 = vpop.f32.mrb[2].mxu1 }
 0x232   :  { %v706_v3 = vpop.f32.mrb[3].mxu1 }
 0x233   :  { %v707_v4 = vadd.f32 %v706_v3, %v705_v1 }
 0x235   :  { %v557_v5 = vadd.f32 %v707_v4, %v671_v2 }
 0x237   :  { %v560_v6 = vmax.f32 %v557_v5, 0.0 }
 0x239   :  { %758 = vmatmul.mubr.f32.vlgmr.msra.gmra.mrb[4].mxu1 %v560_v6 }
 0x30c   :  { %v650_v8 = vpop.f32.mrb[4].mxu1 }
 0x30d   :  { %v651_v9 = vadd.f32 %v672_v7, %v650_v8  ;;  %v759_v10 = vpop.f32.mrb[5].mxu1 }
 0x30f   :  { %654 = vmax.xlane.f32.xlu0 %v651_v9 }
 0x39c   :  { %v655_v11 = vpop.xlane.xlu0 %654 }
 0x39d   :  { %v656_v12 = vsub.f32 %v651_v9, %v655_v11 }
 0x39f   :  { %v657_v13 = vmul.f32 1.442695, %v656_v12 }
 0x3a1   :  { %1017 = vpow2.f32 %v657_v13 }
 0x3ab   :  { %v1018_v14 = vpop.eup %1017 }
 0x3ac   :  { %659 = vadd.xlane.f32.xlu0 %v1018_v14 }
 0x439   :  { %v660_v15 = vpop.xlane.xlu0 %659 }
 0x43a   :  { %1019 = vrcp.f32 %v660_v15 }
 0x444   :  { %v1020_v16 = vpop.eup %1019 }
 0x445   :  { %v662_v17 = vmul.f32 %v1020_v16, %v660_v15 }
 0x447   :  { %v663_v18 = vsub.f32 2.0, %v662_v17 }
 0x449   :  { %v664_v19 = vmul.f32 %v1020_v16, %v663_v18 }
 0x44b   :  { %v665_v20 = vmul.f32 %v1018_v14, %v664_v19 }
 0x44d   :  { %666 = vst [vmem:[%s1821_s7] sm:$0xff] %v665_v20 }

</bundles_post_ra>
